<compile_context>
chip_gen: v7x
topology: tpu7x:2x2x1
jax: 0.10.0
libtpu: 0.0.40
codegen_flags: <defaults>
</compile_context>

<pallas_src>
import jax
import jax.numpy as jnp
from jax import lax
from jax.experimental import pallas as pl
from jax.experimental.pallas import tpu as pltpu


def _shift_cols(x, delta):
    """y[..., p] = x[..., (p + delta) % HW]; wrapped columns are masked by caller.

    Static-shift jnp.roll lowers to two lane slices + a concatenate; it can be
    swapped for pltpu.roll (single XLU vrot) if the copies show up in profiles.
    """
    if delta == 0:
        return x
    return jnp.roll(x, -delta, axis=-1)


def _make_conv_stats_kernel(Cin, Cout, H, W):
    """Phase 1: conv1 via 9 shifted matmuls + per-image BN partial sums."""
    HW = H * W
    deltas = tuple(dy * W + dx for dy in (-1, 0, 1) for dx in (-1, 0, 1))

    def kernel(x_ref, w_ref, cmask_ref, conv_ref, stat_ref):
        # x_ref    : (1, Cin, HW)  bf16  one image, channels x flat-spatial
        # w_ref    : (9, Cout, Cin) bf16 conv1 taps (tap = ky*3 + kx)
        # cmask_ref: (9, HW)       bf16  0/1 validity mask per tap (zero padding)
        # conv_ref : (1, Cout, HW) f32   conv1 output for this image
        # stat_ref : (1, Cout, 2)  f32   per-image [sum, sum_sq] over HW
        x = x_ref[0]                                        # (Cin, HW) bf16
        acc = jnp.zeros((Cout, HW), jnp.float32)
        for tap, delta in enumerate(deltas):
            xs = _shift_cols(x, delta) * cmask_ref[tap:tap + 1, :]
            acc = acc + jnp.dot(w_ref[tap], xs,
                                preferred_element_type=jnp.float32)
        conv_ref[0] = acc
        stat_ref[0, :, 0:1] = jnp.sum(acc, axis=1, keepdims=True)
        stat_ref[0, :, 1:2] = jnp.sum(acc * acc, axis=1, keepdims=True)

    return kernel


def _make_attention_kernel(Cout, H, W):
    """Phase 2: BN + ReLU + ECA + spatial attention + residual + ReLU."""
    HW = H * W
    sa_deltas = tuple(dy * W + dx for dy in (-2, 0, 2) for dx in (-2, 0, 2))
    inv_hw = 1.0 / HW
    inv_c = 1.0 / Cout

    def kernel(conv_ref, res_ref, scale_ref, shift_ref, eca_ref, saw_ref,
               sab_ref, smask_ref, out_ref):
        # conv_ref/res_ref: (1, Cout, HW) f32      scale/shift: (Cout, 1) f32
        # eca_ref: (3,) SMEM   saw_ref: (2, 9) SMEM   sab_ref: (1,) SMEM
        # smask_ref: (9, HW) f32                   out_ref: (1, 2, Cout, HW) f32
        out_n = jnp.maximum(conv_ref[0] * scale_ref[...] + shift_ref[...], 0.0)
        res = res_ref[0]                                      # (Cout, HW)

        # ---- ECA: GAP -> k=3 channel conv (shifted slices) -> sigmoid
        #      -> hardshrink(0.2); out1 = eca(out)*out + residual, relu.
        y = jnp.sum(out_n, axis=1, keepdims=True) * inv_hw    # (Cout, 1)
        zc = jnp.zeros((1, 1), jnp.float32)
        y_prev = jnp.concatenate([zc, y[:-1, :]], axis=0)      # y[c-1]
        y_next = jnp.concatenate([y[1:, :], zc], axis=0)       # y[c+1]
        yc = eca_ref[0] * y_prev + eca_ref[1] * y + eca_ref[2] * y_next
        ysig = jax.nn.sigmoid(yc)
        yattn = jnp.where(jnp.abs(ysig) > 0.2, ysig, 0.0)
        # Store out1 before building the SA branch to cut live temporaries.
        out_ref[0, 0] = jnp.maximum(out_n * out_n * yattn + res, 0.0)

        # ---- Spatial attention: dilated 3x3 conv as 9 shifted-slice FMAs on the
        #      (1, HW) channel-mean / channel-max maps (row-edge masked).
        avg = jnp.sum(out_n, axis=0, keepdims=True) * inv_c    # (1, HW)
        mx = jnp.max(out_n, axis=0, keepdims=True)              # (1, HW)
        s = jnp.zeros((1, HW), jnp.float32) + sab_ref[0]
        for tap, delta in enumerate(sa_deltas):
            a_sh = _shift_cols(avg, delta)
            m_sh = _shift_cols(mx, delta)
            s = s + smask_ref[tap:tap + 1, :] * (saw_ref[0, tap] * a_sh
                                                 + saw_ref[1, tap] * m_sh)
        ssig = jax.nn.sigmoid(s)
        sattn = jnp.where(jnp.abs(ssig) > 0.2, ssig, 0.0)
        out_ref[0, 1] = jnp.maximum(sattn * out_n + res, 0.0)

    return kernel


def _tap_masks(H, W, offsets, dtype):
    """(len(offsets), H*W) 0/1 masks: output position valid for a (dy,dx) tap."""
    HW = H * W
    p = jnp.arange(HW)
    hp, wp = p // W, p % W
    rows = []
    for dy, dx in offsets:
        ok = (hp + dy >= 0) & (hp + dy < H) & (wp + dx >= 0) & (wp + dx < W)
        rows.append(ok)
    return jnp.stack(rows, axis=0).astype(dtype)


def basic_block_forward(x_nchw, params):
    """NCHW input -> (N, 2*C*H*W), matching BasicBlock.forward."""
    N, C, H, W = x_nchw.shape
    HW = H * W
    x = x_nchw.astype(jnp.float32).reshape(N, C, HW)   # residual, NCHW-flattened
    x_bf16 = x.astype(jnp.bfloat16)                     # MXU operand precision

    conv1_w = params['conv1_w'].astype(jnp.float32)
    Cout = conv1_w.shape[0]
    assert Cout == C, "stride=1 / downsample=None requires inplanes == planes"
    # conv1 weights (Cout, Cin, 3, 3) -> (9, Cout, Cin), tap index = ky*3 + kx.
    w_taps = jnp.transpose(conv1_w, (2, 3, 0, 1)).reshape(9, Cout, C)
    w_taps = w_taps.astype(jnp.bfloat16)

    conv_offsets = [(dy, dx) for dy in (-1, 0, 1) for dx in (-1, 0, 1)]
    sa_offsets = [(dy, dx) for dy in (-2, 0, 2) for dx in (-2, 0, 2)]
    cmask = _tap_masks(H, W, conv_offsets, jnp.bfloat16)   # (9, HW)
    smask = _tap_masks(H, W, sa_offsets, jnp.float32)      # (9, HW)

    mosaic = pltpu.CompilerParams(dimension_semantics=("parallel",))
    smem = pltpu.MemorySpace.SMEM

    # ---- Phase 1: conv1 + per-image BN partial sums (grid over batch) ---------
    conv, stats = pl.pallas_call(
        _make_conv_stats_kernel(C, Cout, H, W),
        grid=(N,),
        in_specs=[
            pl.BlockSpec((1, C, HW), lambda n: (n, 0, 0)),      # x (bf16)
            pl.BlockSpec((9, Cout, C), lambda n: (0, 0, 0)),    # conv1 taps
            pl.BlockSpec((9, HW), lambda n: (0, 0)),            # tap masks
        ],
        out_specs=[
            pl.BlockSpec((1, Cout, HW), lambda n: (n, 0, 0)),   # conv1 output
            pl.BlockSpec((1, Cout, 2), lambda n: (n, 0, 0)),    # [sum, sum_sq]
        ],
        out_shape=[
            jax.ShapeDtypeStruct((N, Cout, HW), jnp.float32),
            jax.ShapeDtypeStruct((N, Cout, 2), jnp.float32),
        ],
        compiler_params=mosaic,
    )(x_bf16, w_taps, cmask)

    # ---- Batch-norm statistics: tiny O(N*C) reduction between the two phases.
    # Training-mode BN (biased variance).  E[x^2]-E[x]^2 is clamped at 0 to guard
    # f32 cancellation; at large N*HW switch to a shifted/Welford accumulation.
    cnt = float(N * HW)
    mu = jnp.sum(stats[:, :, 0], axis=0) / cnt
    ex2 = jnp.sum(stats[:, :, 1], axis=0) / cnt
    var = jnp.maximum(ex2 - mu * mu, 0.0)
    rstd = lax.rsqrt(var + 1e-5)
    gamma = params['bn1_gamma'].reshape(-1).astype(jnp.float32)
    beta = params['bn1_beta'].reshape(-1).astype(jnp.float32)
    scale = (gamma * rstd).reshape(Cout, 1)
    shift = (beta - mu * gamma * rstd).reshape(Cout, 1)

    eca_w = params['eca_w'].reshape(3).astype(jnp.float32)
    sa_w = params['sa_w'].reshape(2, 9).astype(jnp.float32)   # [avg|max] x taps
    sa_b = params['sa_b'].reshape(1).astype(jnp.float32)

    # ---- Phase 2: normalize + ECA + spatial attention + residual (grid over N) -
    out = pl.pallas_call(
        _make_attention_kernel(Cout, H, W),
        grid=(N,),
        in_specs=[
            pl.BlockSpec((1, Cout, HW), lambda n: (n, 0, 0)),   # conv1 output
            pl.BlockSpec((1, Cout, HW), lambda n: (n, 0, 0)),   # residual x
            pl.BlockSpec((Cout, 1), lambda n: (0, 0)),          # bn scale
            pl.BlockSpec((Cout, 1), lambda n: (0, 0)),          # bn shift
            pl.BlockSpec(memory_space=smem),                    # eca_w (3,)
            pl.BlockSpec(memory_space=smem),                    # sa_w (2, 9)
            pl.BlockSpec(memory_space=smem),                    # sa_b (1,)
            pl.BlockSpec((9, HW), lambda n: (0, 0)),            # sa tap masks
        ],
        out_specs=pl.BlockSpec((1, 2, Cout, HW), lambda n: (n, 0, 0, 0)),
        out_shape=jax.ShapeDtypeStruct((N, 2, Cout, HW), jnp.float32),
        compiler_params=mosaic,
    )(conv, x, scale, shift, eca_w, sa_w, sa_b, smask)

    # Row-major flatten of (N, 2, C, H*W) == torch.cat([out1.view(N,-1),
    # out2.view(N,-1)], dim=1) on NCHW tensors -- reshape only, no transpose.
    return out.reshape(N, 2 * Cout * HW)


def reference_forward(x_nchw, params):
    """Pure-JAX (XLA) reference of BasicBlock.forward for validation.

    conv1 operands are rounded to bf16 to mirror the kernel's MXU operand
    precision (accumulation stays f32 on both sides); all other math is f32."""
    f32 = jnp.float32
    x = x_nchw.astype(f32)
    N = x.shape[0]
    xq = x.astype(jnp.bfloat16).astype(f32)
    wq = params['conv1_w'].astype(jnp.bfloat16).astype(f32)
    conv = lax.conv_general_dilated(
        xq, wq, (1, 1), ((1, 1), (1, 1)),
        dimension_numbers=('NCHW', 'OIHW', 'NCHW'),
        precision=lax.Precision.HIGHEST)
    mu = jnp.mean(conv, axis=(0, 2, 3), keepdims=True)
    var = jnp.mean((conv - mu) ** 2, axis=(0, 2, 3), keepdims=True)
    bn = ((conv - mu) / jnp.sqrt(var + 1e-5)
          * params['bn1_gamma'].reshape(1, -1, 1, 1)
          + params['bn1_beta'].reshape(1, -1, 1, 1))
    out = jnp.maximum(bn, 0.0)
    # ECA
    y = jnp.mean(out, axis=(2, 3))                                  # (N, C)
    w = params['eca_w'].reshape(3).astype(f32)
    ypad = jnp.pad(y, ((0, 0), (1, 1)))
    yc = w[0] * ypad[:, :-2] + w[1] * ypad[:, 1:-1] + w[2] * ypad[:, 2:]
    ysig = jax.nn.sigmoid(yc)
    yattn = jnp.where(jnp.abs(ysig) > 0.2, ysig, 0.0)
    out1 = out * yattn[:, :, None, None] * out
    # Spatial attention (3x3, dilation 2, padding 2)
    avgc = jnp.mean(out, axis=1, keepdims=True)
    maxc = jnp.max(out, axis=1, keepdims=True)
    sin = jnp.concatenate([avgc, maxc], axis=1)
    s = lax.conv_general_dilated(
        sin, params['sa_w'].astype(f32), (1, 1), ((2, 2), (2, 2)),
        rhs_dilation=(2, 2),
        dimension_numbers=('NCHW', 'OIHW', 'NCHW'),
        precision=lax.Precision.HIGHEST) + params['sa_b'].reshape(1, 1, 1, 1)
    ssig = jax.nn.sigmoid(s)
    sattn = jnp.where(jnp.abs(ssig) > 0.2, ssig, 0.0)
    out2 = sattn * out
    out1 = jnp.maximum(out1 + x, 0.0).reshape(N, -1)
    out2 = jnp.maximum(out2 + x, 0.0).reshape(N, -1)
    return jnp.concatenate([out1, out2], axis=1)


if __name__ == "__main__":
    key = jax.random.PRNGKey(0)
    N, C, H, W = 2, 4, 16, 16            # inplanes == planes (no downsample)
    k1, k2, k3, k4, k5 = jax.random.split(key, 5)
    x = jax.random.normal(k1, (N, C, H, W), jnp.float32)
    params = {
        'conv1_w': jax.random.normal(k2, (C, C, 3, 3), jnp.float32) * 0.2,
        'bn1_gamma': jnp.ones((C,), jnp.float32),
        'bn1_beta': jnp.zeros((C,), jnp.float32),
        'eca_w': jax.random.normal(k3, (1, 1, 3), jnp.float32) * 0.5,
        'sa_w': jax.random.normal(k4, (1, 2, 3, 3), jnp.float32) * 0.3,
        'sa_b': jax.random.normal(k5, (1,), jnp.float32) * 0.1,
    }

    fwd = jax.jit(basic_block_forward)
    out = fwd(x, params)
    jax.block_until_ready(out)
    assert out.shape == (N, 2 * C * H * W), out.shape

    ref = reference_forward(x, params)
    max_err = float(jnp.max(jnp.abs(out - ref)))
    # bf16 conv operands (mirrored in the reference) -> 1e-2 tolerance.
    assert jnp.allclose(out, ref, rtol=1e-2, atol=1e-2), max_err

    print("KERNEL_OK")
</pallas_src>

<mosaic_0001>
module attributes {stable_mosaic.version = 11 : i64} {
  func.func @kernel(%arg0: i32, %arg1: memref<1x4x256xbf16, #tpu.memory_space<vmem>>, %arg2: memref<9x4x4xbf16, #tpu.memory_space<vmem>>, %arg3: memref<9x256xbf16, #tpu.memory_space<vmem>>, %arg4: memref<1x4x256xf32, #tpu.memory_space<vmem>>, %arg5: memref<1x4x2xf32, #tpu.memory_space<vmem>>) attributes {dimension_semantics = [#tpu.dimension_semantics<parallel>], iteration_bounds = array<i64: 2>, scalar_prefetch = 0 : i64, scratch_operands = 0 : i64, tpu.core_type = #tpu.core_type<tc>, window_params = [{transform_indices = @transform_0, window_bounds = array<i64: 1, 4, 256>}, {pipeline_mode = #tpu.pipeline_mode<synchronous>, transform_indices = @transform_1, window_bounds = array<i64: 9, 4, 4>}, {pipeline_mode = #tpu.pipeline_mode<synchronous>, transform_indices = @transform_2, window_bounds = array<i64: 9, 256>}, {transform_indices = @transform_3, window_bounds = array<i64: 1, 4, 256>}, {transform_indices = @transform_4, window_bounds = array<i64: 1, 4, 2>}]} {
    %c0 = arith.constant 0 : index
    %c0_0 = arith.constant 0 : index
    %c0_1 = arith.constant 0 : index
    %0 = vector.load %arg1[%c0, %c0_0, %c0_1] : memref<1x4x256xbf16, #tpu.memory_space<vmem>>, vector<1x4x256xbf16>
    %1 = vector.shape_cast %0 : vector<1x4x256xbf16> to vector<4x256xbf16>
    %cst = arith.constant 0.000000e+00 : f32
    %2 = vector.broadcast %cst : f32 to vector<4x256xf32>
    %3 = vector.extract_strided_slice %1 {offsets = [0, 239], sizes = [4, 17], strides = [1, 1]} : vector<4x256xbf16> to vector<4x17xbf16>
    %4 = vector.extract_strided_slice %1 {offsets = [0, 0], sizes = [4, 239], strides = [1, 1]} : vector<4x256xbf16> to vector<4x239xbf16>
    %5 = tpu.concatenate %3, %4 in 1 : vector<4x17xbf16>, vector<4x239xbf16> -> vector<4x256xbf16>
    %c0_2 = arith.constant 0 : index
    %c0_3 = arith.constant 0 : index
    %6 = vector.load %arg3[%c0_2, %c0_3] : memref<9x256xbf16, #tpu.memory_space<vmem>>, vector<1x256xbf16>
    %7 = vector.broadcast %6 : vector<1x256xbf16> to vector<4x256xbf16>
    %8 = arith.mulf %5, %7 : vector<4x256xbf16>
    %c0_4 = arith.constant 0 : index
    %c0_5 = arith.constant 0 : index
    %c0_6 = arith.constant 0 : index
    %9 = vector.load %arg2[%c0_4, %c0_5, %c0_6] : memref<9x4x4xbf16, #tpu.memory_space<vmem>>, vector<1x4x4xbf16>
    %10 = vector.shape_cast %9 : vector<1x4x4xbf16> to vector<4x4xbf16>
    %cst_7 = arith.constant dense<0.000000e+00> : vector<4x256xf32>
    %11 = tpu.matmul %10, %8, %cst_7 {dimension_numbers = #tpu.dot_dimension_numbers<[1], [0], [0], [1], [0, 0, 1, 1], [], []>} : vector<4x4xbf16>, vector<4x256xbf16>, vector<4x256xf32> -> vector<4x256xf32>
    %12 = arith.addf %2, %11 : vector<4x256xf32>
    %13 = vector.extract_strided_slice %1 {offsets = [0, 240], sizes = [4, 16], strides = [1, 1]} : vector<4x256xbf16> to vector<4x16xbf16>
    %14 = vector.extract_strided_slice %1 {offsets = [0, 0], sizes = [4, 240], strides = [1, 1]} : vector<4x256xbf16> to vector<4x240xbf16>
    %15 = tpu.concatenate %13, %14 in 1 : vector<4x16xbf16>, vector<4x240xbf16> -> vector<4x256xbf16>
    %c1 = arith.constant 1 : index
    %c0_8 = arith.constant 0 : index
    %16 = vector.load %arg3[%c1, %c0_8] : memref<9x256xbf16, #tpu.memory_space<vmem>>, vector<1x256xbf16>
    %17 = vector.broadcast %16 : vector<1x256xbf16> to vector<4x256xbf16>
    %18 = arith.mulf %15, %17 : vector<4x256xbf16>
    %c1_9 = arith.constant 1 : index
    %c0_10 = arith.constant 0 : index
    %c0_11 = arith.constant 0 : index
    %19 = vector.load %arg2[%c1_9, %c0_10, %c0_11] : memref<9x4x4xbf16, #tpu.memory_space<vmem>>, vector<1x4x4xbf16>
    %20 = vector.shape_cast %19 : vector<1x4x4xbf16> to vector<4x4xbf16>
    %cst_12 = arith.constant dense<0.000000e+00> : vector<4x256xf32>
    %21 = tpu.matmul %20, %18, %cst_12 {dimension_numbers = #tpu.dot_dimension_numbers<[1], [0], [0], [1], [0, 0, 1, 1], [], []>} : vector<4x4xbf16>, vector<4x256xbf16>, vector<4x256xf32> -> vector<4x256xf32>
    %22 = arith.addf %12, %21 : vector<4x256xf32>
    %23 = vector.extract_strided_slice %1 {offsets = [0, 241], sizes = [4, 15], strides = [1, 1]} : vector<4x256xbf16> to vector<4x15xbf16>
    %24 = vector.extract_strided_slice %1 {offsets = [0, 0], sizes = [4, 241], strides = [1, 1]} : vector<4x256xbf16> to vector<4x241xbf16>
    %25 = tpu.concatenate %23, %24 in 1 : vector<4x15xbf16>, vector<4x241xbf16> -> vector<4x256xbf16>
    %c2 = arith.constant 2 : index
    %c0_13 = arith.constant 0 : index
    %26 = vector.load %arg3[%c2, %c0_13] : memref<9x256xbf16, #tpu.memory_space<vmem>>, vector<1x256xbf16>
    %27 = vector.broadcast %26 : vector<1x256xbf16> to vector<4x256xbf16>
    %28 = arith.mulf %25, %27 : vector<4x256xbf16>
    %c2_14 = arith.constant 2 : index
    %c0_15 = arith.constant 0 : index
    %c0_16 = arith.constant 0 : index
    %29 = vector.load %arg2[%c2_14, %c0_15, %c0_16] : memref<9x4x4xbf16, #tpu.memory_space<vmem>>, vector<1x4x4xbf16>
    %30 = vector.shape_cast %29 : vector<1x4x4xbf16> to vector<4x4xbf16>
    %cst_17 = arith.constant dense<0.000000e+00> : vector<4x256xf32>
    %31 = tpu.matmul %30, %28, %cst_17 {dimension_numbers = #tpu.dot_dimension_numbers<[1], [0], [0], [1], [0, 0, 1, 1], [], []>} : vector<4x4xbf16>, vector<4x256xbf16>, vector<4x256xf32> -> vector<4x256xf32>
    %32 = arith.addf %22, %31 : vector<4x256xf32>
    %33 = vector.extract_strided_slice %1 {offsets = [0, 255], sizes = [4, 1], strides = [1, 1]} : vector<4x256xbf16> to vector<4x1xbf16>
    %34 = vector.extract_strided_slice %1 {offsets = [0, 0], sizes = [4, 255], strides = [1, 1]} : vector<4x256xbf16> to vector<4x255xbf16>
    %35 = tpu.concatenate %33, %34 in 1 : vector<4x1xbf16>, vector<4x255xbf16> -> vector<4x256xbf16>
    %c3 = arith.constant 3 : index
    %c0_18 = arith.constant 0 : index
    %36 = vector.load %arg3[%c3, %c0_18] : memref<9x256xbf16, #tpu.memory_space<vmem>>, vector<1x256xbf16>
    %37 = vector.broadcast %36 : vector<1x256xbf16> to vector<4x256xbf16>
    %38 = arith.mulf %35, %37 : vector<4x256xbf16>
    %c3_19 = arith.constant 3 : index
    %c0_20 = arith.constant 0 : index
    %c0_21 = arith.constant 0 : index
    %39 = vector.load %arg2[%c3_19, %c0_20, %c0_21] : memref<9x4x4xbf16, #tpu.memory_space<vmem>>, vector<1x4x4xbf16>
    %40 = vector.shape_cast %39 : vector<1x4x4xbf16> to vector<4x4xbf16>
    %cst_22 = arith.constant dense<0.000000e+00> : vector<4x256xf32>
    %41 = tpu.matmul %40, %38, %cst_22 {dimension_numbers = #tpu.dot_dimension_numbers<[1], [0], [0], [1], [0, 0, 1, 1], [], []>} : vector<4x4xbf16>, vector<4x256xbf16>, vector<4x256xf32> -> vector<4x256xf32>
    %42 = arith.addf %32, %41 : vector<4x256xf32>
    %c4 = arith.constant 4 : index
    %c0_23 = arith.constant 0 : index
    %43 = vector.load %arg3[%c4, %c0_23] : memref<9x256xbf16, #tpu.memory_space<vmem>>, vector<1x256xbf16>
    %44 = vector.broadcast %43 : vector<1x256xbf16> to vector<4x256xbf16>
    %45 = arith.mulf %1, %44 : vector<4x256xbf16>
    %c4_24 = arith.constant 4 : index
    %c0_25 = arith.constant 0 : index
    %c0_26 = arith.constant 0 : index
    %46 = vector.load %arg2[%c4_24, %c0_25, %c0_26] : memref<9x4x4xbf16, #tpu.memory_space<vmem>>, vector<1x4x4xbf16>
    %47 = vector.shape_cast %46 : vector<1x4x4xbf16> to vector<4x4xbf16>
    %cst_27 = arith.constant dense<0.000000e+00> : vector<4x256xf32>
    %48 = tpu.matmul %47, %45, %cst_27 {dimension_numbers = #tpu.dot_dimension_numbers<[1], [0], [0], [1], [0, 0, 1, 1], [], []>} : vector<4x4xbf16>, vector<4x256xbf16>, vector<4x256xf32> -> vector<4x256xf32>
    %49 = arith.addf %42, %48 : vector<4x256xf32>
    %50 = vector.extract_strided_slice %1 {offsets = [0, 1], sizes = [4, 255], strides = [1, 1]} : vector<4x256xbf16> to vector<4x255xbf16>
    %51 = vector.extract_strided_slice %1 {offsets = [0, 0], sizes = [4, 1], strides = [1, 1]} : vector<4x256xbf16> to vector<4x1xbf16>
    %52 = tpu.concatenate %50, %51 in 1 : vector<4x255xbf16>, vector<4x1xbf16> -> vector<4x256xbf16>
    %c5 = arith.constant 5 : index
    %c0_28 = arith.constant 0 : index
    %53 = vector.load %arg3[%c5, %c0_28] : memref<9x256xbf16, #tpu.memory_space<vmem>>, vector<1x256xbf16>
    %54 = vector.broadcast %53 : vector<1x256xbf16> to vector<4x256xbf16>
    %55 = arith.mulf %52, %54 : vector<4x256xbf16>
    %c5_29 = arith.constant 5 : index
    %c0_30 = arith.constant 0 : index
    %c0_31 = arith.constant 0 : index
    %56 = vector.load %arg2[%c5_29, %c0_30, %c0_31] : memref<9x4x4xbf16, #tpu.memory_space<vmem>>, vector<1x4x4xbf16>
    %57 = vector.shape_cast %56 : vector<1x4x4xbf16> to vector<4x4xbf16>
    %cst_32 = arith.constant dense<0.000000e+00> : vector<4x256xf32>
    %58 = tpu.matmul %57, %55, %cst_32 {dimension_numbers = #tpu.dot_dimension_numbers<[1], [0], [0], [1], [0, 0, 1, 1], [], []>} : vector<4x4xbf16>, vector<4x256xbf16>, vector<4x256xf32> -> vector<4x256xf32>
    %59 = arith.addf %49, %58 : vector<4x256xf32>
    %60 = vector.extract_strided_slice %1 {offsets = [0, 15], sizes = [4, 241], strides = [1, 1]} : vector<4x256xbf16> to vector<4x241xbf16>
    %61 = vector.extract_strided_slice %1 {offsets = [0, 0], sizes = [4, 15], strides = [1, 1]} : vector<4x256xbf16> to vector<4x15xbf16>
    %62 = tpu.concatenate %60, %61 in 1 : vector<4x241xbf16>, vector<4x15xbf16> -> vector<4x256xbf16>
    %c6 = arith.constant 6 : index
    %c0_33 = arith.constant 0 : index
    %63 = vector.load %arg3[%c6, %c0_33] : memref<9x256xbf16, #tpu.memory_space<vmem>>, vector<1x256xbf16>
    %64 = vector.broadcast %63 : vector<1x256xbf16> to vector<4x256xbf16>
    %65 = arith.mulf %62, %64 : vector<4x256xbf16>
    %c6_34 = arith.constant 6 : index
    %c0_35 = arith.constant 0 : index
    %c0_36 = arith.constant 0 : index
    %66 = vector.load %arg2[%c6_34, %c0_35, %c0_36] : memref<9x4x4xbf16, #tpu.memory_space<vmem>>, vector<1x4x4xbf16>
    %67 = vector.shape_cast %66 : vector<1x4x4xbf16> to vector<4x4xbf16>
    %cst_37 = arith.constant dense<0.000000e+00> : vector<4x256xf32>
    %68 = tpu.matmul %67, %65, %cst_37 {dimension_numbers = #tpu.dot_dimension_numbers<[1], [0], [0], [1], [0, 0, 1, 1], [], []>} : vector<4x4xbf16>, vector<4x256xbf16>, vector<4x256xf32> -> vector<4x256xf32>
    %69 = arith.addf %59, %68 : vector<4x256xf32>
    %70 = vector.extract_strided_slice %1 {offsets = [0, 16], sizes = [4, 240], strides = [1, 1]} : vector<4x256xbf16> to vector<4x240xbf16>
    %71 = vector.extract_strided_slice %1 {offsets = [0, 0], sizes = [4, 16], strides = [1, 1]} : vector<4x256xbf16> to vector<4x16xbf16>
    %72 = tpu.concatenate %70, %71 in 1 : vector<4x240xbf16>, vector<4x16xbf16> -> vector<4x256xbf16>
    %c7 = arith.constant 7 : index
    %c0_38 = arith.constant 0 : index
    %73 = vector.load %arg3[%c7, %c0_38] : memref<9x256xbf16, #tpu.memory_space<vmem>>, vector<1x256xbf16>
    %74 = vector.broadcast %73 : vector<1x256xbf16> to vector<4x256xbf16>
    %75 = arith.mulf %72, %74 : vector<4x256xbf16>
    %c7_39 = arith.constant 7 : index
    %c0_40 = arith.constant 0 : index
    %c0_41 = arith.constant 0 : index
    %76 = vector.load %arg2[%c7_39, %c0_40, %c0_41] : memref<9x4x4xbf16, #tpu.memory_space<vmem>>, vector<1x4x4xbf16>
    %77 = vector.shape_cast %76 : vector<1x4x4xbf16> to vector<4x4xbf16>
    %cst_42 = arith.constant dense<0.000000e+00> : vector<4x256xf32>
    %78 = tpu.matmul %77, %75, %cst_42 {dimension_numbers = #tpu.dot_dimension_numbers<[1], [0], [0], [1], [0, 0, 1, 1], [], []>} : vector<4x4xbf16>, vector<4x256xbf16>, vector<4x256xf32> -> vector<4x256xf32>
    %79 = arith.addf %69, %78 : vector<4x256xf32>
    %80 = vector.extract_strided_slice %1 {offsets = [0, 17], sizes = [4, 239], strides = [1, 1]} : vector<4x256xbf16> to vector<4x239xbf16>
    %81 = vector.extract_strided_slice %1 {offsets = [0, 0], sizes = [4, 17], strides = [1, 1]} : vector<4x256xbf16> to vector<4x17xbf16>
    %82 = tpu.concatenate %80, %81 in 1 : vector<4x239xbf16>, vector<4x17xbf16> -> vector<4x256xbf16>
    %c8 = arith.constant 8 : index
    %c0_43 = arith.constant 0 : index
    %83 = vector.load %arg3[%c8, %c0_43] : memref<9x256xbf16, #tpu.memory_space<vmem>>, vector<1x256xbf16>
    %84 = vector.broadcast %83 : vector<1x256xbf16> to vector<4x256xbf16>
    %85 = arith.mulf %82, %84 : vector<4x256xbf16>
    %c8_44 = arith.constant 8 : index
    %c0_45 = arith.constant 0 : index
    %c0_46 = arith.constant 0 : index
    %86 = vector.load %arg2[%c8_44, %c0_45, %c0_46] : memref<9x4x4xbf16, #tpu.memory_space<vmem>>, vector<1x4x4xbf16>
    %87 = vector.shape_cast %86 : vector<1x4x4xbf16> to vector<4x4xbf16>
    %cst_47 = arith.constant dense<0.000000e+00> : vector<4x256xf32>
    %88 = tpu.matmul %87, %85, %cst_47 {dimension_numbers = #tpu.dot_dimension_numbers<[1], [0], [0], [1], [0, 0, 1, 1], [], []>} : vector<4x4xbf16>, vector<4x256xbf16>, vector<4x256xf32> -> vector<4x256xf32>
    %89 = arith.addf %79, %88 : vector<4x256xf32>
    %c0_48 = arith.constant 0 : index
    %c0_49 = arith.constant 0 : index
    %c0_50 = arith.constant 0 : index
    %90 = vector.load %arg4[%c0_48, %c0_49, %c0_50] : memref<1x4x256xf32, #tpu.memory_space<vmem>>, vector<1x4x256xf32>
    %91 = vector.shape_cast %90 : vector<1x4x256xf32> to vector<4x256xf32>
    %92 = vector.shape_cast %89 : vector<4x256xf32> to vector<1x4x256xf32>
    tpu.vector_store %arg4[%c0_48, %c0_49, %c0_50], %92 {strides = array<i32>} : memref<1x4x256xf32, #tpu.memory_space<vmem>>, vector<1x4x256xf32>,
    %cst_51 = arith.constant dense<0.000000e+00> : vector<4xf32>
    %93 = vector.multi_reduction <add>, %89, %cst_51 [1] : vector<4x256xf32> to vector<4xf32>
    %94 = vector.shape_cast %93 : vector<4xf32> to vector<4x1xf32>
    %c0_52 = arith.constant 0 : index
    %c0_53 = arith.constant 0 : index
    %c0_54 = arith.constant 0 : index
    %95 = vector.load %arg5[%c0_52, %c0_53, %c0_54] : memref<1x4x2xf32, #tpu.memory_space<vmem>>, vector<1x4x1xf32>
    %96 = vector.shape_cast %95 : vector<1x4x1xf32> to vector<4x1xf32>
    %97 = vector.shape_cast %94 : vector<4x1xf32> to vector<1x4x1xf32>
    tpu.vector_store %arg5[%c0_52, %c0_53, %c0_54], %97 {strides = array<i32>} : memref<1x4x2xf32, #tpu.memory_space<vmem>>, vector<1x4x1xf32>,
    %98 = arith.mulf %89, %89 : vector<4x256xf32>
    %cst_55 = arith.constant dense<0.000000e+00> : vector<4xf32>
    %99 = vector.multi_reduction <add>, %98, %cst_55 [1] : vector<4x256xf32> to vector<4xf32>
    %100 = vector.shape_cast %99 : vector<4xf32> to vector<4x1xf32>
    %c0_56 = arith.constant 0 : index
    %c0_57 = arith.constant 0 : index
    %c1_58 = arith.constant 1 : index
    %101 = vector.load %arg5[%c0_56, %c0_57, %c1_58] : memref<1x4x2xf32, #tpu.memory_space<vmem>>, vector<1x4x1xf32>
    %102 = vector.shape_cast %101 : vector<1x4x1xf32> to vector<4x1xf32>
    %103 = vector.shape_cast %100 : vector<4x1xf32> to vector<1x4x1xf32>
    tpu.vector_store %arg5[%c0_56, %c0_57, %c1_58], %103 {strides = array<i32>} : memref<1x4x2xf32, #tpu.memory_space<vmem>>, vector<1x4x1xf32>,
    return
  }
  func.func @transform_0(%arg0: i32) -> (i32, i32, i32) {
    %c0_i32 = arith.constant 0 : i32
    %c0_i32_0 = arith.constant 0 : i32
    %c0_i32_1 = arith.constant 0 : i32
    return %arg0, %c0_i32, %c0_i32_0 : i32, i32, i32
  }
  func.func @transform_1(%arg0: i32) -> (i32, i32, i32) {
    %c0_i32 = arith.constant 0 : i32
    %c0_i32_0 = arith.constant 0 : i32
    %c0_i32_1 = arith.constant 0 : i32
    %c0_i32_2 = arith.constant 0 : i32
    return %c0_i32, %c0_i32_0, %c0_i32_1 : i32, i32, i32
  }
  func.func @transform_2(%arg0: i32) -> (i32, i32) {
    %c0_i32 = arith.constant 0 : i32
    %c0_i32_0 = arith.constant 0 : i32
    %c0_i32_1 = arith.constant 0 : i32
    return %c0_i32, %c0_i32_0 : i32, i32
  }
  func.func @transform_3(%arg0: i32) -> (i32, i32, i32) {
    %c0_i32 = arith.constant 0 : i32
    %c0_i32_0 = arith.constant 0 : i32
    %c0_i32_1 = arith.constant 0 : i32
    return %arg0, %c0_i32, %c0_i32_0 : i32, i32, i32
  }
  func.func @transform_4(%arg0: i32) -> (i32, i32, i32) {
    %c0_i32 = arith.constant 0 : i32
    %c0_i32_0 = arith.constant 0 : i32
    %c0_i32_1 = arith.constant 0 : i32
    return %arg0, %c0_i32, %c0_i32_0 : i32, i32, i32
  }
}

module attributes {stable_mosaic.version = 11 : i64} {
  func.func @kernel(%arg0: i32, %arg1: memref<1x4x256xf32, #tpu.memory_space<vmem>>, %arg2: memref<1x4x256xf32, #tpu.memory_space<vmem>>, %arg3: memref<4x1xf32, #tpu.memory_space<vmem>>, %arg4: memref<4x1xf32, #tpu.memory_space<vmem>>, %arg5: memref<3xf32, #tpu.memory_space<smem>>, %arg6: memref<2x9xf32, #tpu.memory_space<smem>>, %arg7: memref<1xf32, #tpu.memory_space<smem>>, %arg8: memref<9x256xf32, #tpu.memory_space<vmem>>, %arg9: memref<1x2x4x256xf32, #tpu.memory_space<vmem>>) attributes {dimension_semantics = [#tpu.dimension_semantics<parallel>], iteration_bounds = array<i64: 2>, scalar_prefetch = 0 : i64, scratch_operands = 0 : i64, tpu.core_type = #tpu.core_type<tc>, window_params = [{transform_indices = @transform_0, window_bounds = array<i64: 1, 4, 256>}, {transform_indices = @transform_1, window_bounds = array<i64: 1, 4, 256>}, {pipeline_mode = #tpu.pipeline_mode<synchronous>, transform_indices = @transform_2, window_bounds = array<i64: 4, 1>}, {pipeline_mode = #tpu.pipeline_mode<synchronous>, transform_indices = @transform_3, window_bounds = array<i64: 4, 1>}, {transform_indices = @transform_4, window_bounds = array<i64: 3>}, {transform_indices = @transform_5, window_bounds = array<i64: 2, 9>}, {transform_indices = @transform_6, window_bounds = array<i64: 1>}, {pipeline_mode = #tpu.pipeline_mode<synchronous>, transform_indices = @transform_7, window_bounds = array<i64: 9, 256>}, {transform_indices = @transform_8, window_bounds = array<i64: 1, 2, 4, 256>}]} {
    %c0 = arith.constant 0 : index
    %c0_0 = arith.constant 0 : index
    %c0_1 = arith.constant 0 : index
    %0 = vector.load %arg1[%c0, %c0_0, %c0_1] : memref<1x4x256xf32, #tpu.memory_space<vmem>>, vector<1x4x256xf32>
    %1 = vector.shape_cast %0 : vector<1x4x256xf32> to vector<4x256xf32>
    %c0_2 = arith.constant 0 : index
    %c0_3 = arith.constant 0 : index
    %2 = vector.load %arg3[%c0_2, %c0_3] : memref<4x1xf32, #tpu.memory_space<vmem>>, vector<4x1xf32>
    %3 = vector.broadcast %2 : vector<4x1xf32> to vector<4x256xf32>
    %4 = arith.mulf %1, %3 : vector<4x256xf32>
    %c0_4 = arith.constant 0 : index
    %c0_5 = arith.constant 0 : index
    %5 = vector.load %arg4[%c0_4, %c0_5] : memref<4x1xf32, #tpu.memory_space<vmem>>, vector<4x1xf32>
    %6 = vector.broadcast %5 : vector<4x1xf32> to vector<4x256xf32>
    %7 = arith.addf %4, %6 : vector<4x256xf32>
    %cst = arith.constant 0.000000e+00 : f32
    %8 = vector.broadcast %cst : f32 to vector<4x256xf32>
    %9 = arith.maximumf %7, %8 : vector<4x256xf32>
    %c0_6 = arith.constant 0 : index
    %c0_7 = arith.constant 0 : index
    %c0_8 = arith.constant 0 : index
    %10 = vector.load %arg2[%c0_6, %c0_7, %c0_8] : memref<1x4x256xf32, #tpu.memory_space<vmem>>, vector<1x4x256xf32>
    %11 = vector.shape_cast %10 : vector<1x4x256xf32> to vector<4x256xf32>
    %cst_9 = arith.constant dense<0.000000e+00> : vector<4xf32>
    %12 = vector.multi_reduction <add>, %9, %cst_9 [1] : vector<4x256xf32> to vector<4xf32>
    %13 = vector.shape_cast %12 : vector<4xf32> to vector<4x1xf32>
    %cst_10 = arith.constant 3.906250e-03 : f32
    %14 = vector.broadcast %cst_10 : f32 to vector<4x1xf32>
    %15 = arith.mulf %13, %14 : vector<4x1xf32>
    %cst_11 = arith.constant 0.000000e+00 : f32
    %16 = vector.broadcast %cst_11 : f32 to vector<1x1xf32>
    %17 = vector.extract_strided_slice %15 {offsets = [0, 0], sizes = [3, 1], strides = [1, 1]} : vector<4x1xf32> to vector<3x1xf32>
    %18 = tpu.concatenate %16, %17 in 0 : vector<1x1xf32>, vector<3x1xf32> -> vector<4x1xf32>
    %19 = vector.extract_strided_slice %15 {offsets = [1, 0], sizes = [3, 1], strides = [1, 1]} : vector<4x1xf32> to vector<3x1xf32>
    %20 = tpu.concatenate %19, %16 in 0 : vector<3x1xf32>, vector<1x1xf32> -> vector<4x1xf32>
    %c0_12 = arith.constant 0 : index
    %21 = memref.load %arg5[%c0_12] : memref<3xf32, #tpu.memory_space<smem>>
    %22 = vector.broadcast %21 : f32 to vector<4x1xf32>
    %23 = arith.mulf %22, %18 : vector<4x1xf32>
    %c1 = arith.constant 1 : index
    %24 = memref.load %arg5[%c1] : memref<3xf32, #tpu.memory_space<smem>>
    %25 = vector.broadcast %24 : f32 to vector<4x1xf32>
    %26 = arith.mulf %25, %15 : vector<4x1xf32>
    %27 = arith.addf %23, %26 : vector<4x1xf32>
    %c2 = arith.constant 2 : index
    %28 = memref.load %arg5[%c2] : memref<3xf32, #tpu.memory_space<smem>>
    %29 = vector.broadcast %28 : f32 to vector<4x1xf32>
    %30 = arith.mulf %29, %20 : vector<4x1xf32>
    %31 = arith.addf %27, %30 : vector<4x1xf32>
    %32 = arith.negf %31 : vector<4x1xf32>
    %33 = math.exp %32 : vector<4x1xf32>
    %cst_13 = arith.constant 1.000000e+00 : f32
    %34 = vector.broadcast %cst_13 : f32 to vector<4x1xf32>
    %35 = arith.addf %34, %33 : vector<4x1xf32>
    %36 = arith.divf %34, %35 : vector<4x1xf32>
    %37 = math.absf %36 : vector<4x1xf32>
    %cst_14 = arith.constant 2.000000e-01 : f32
    %38 = vector.broadcast %cst_14 : f32 to vector<4x1xf32>
    %39 = arith.cmpf ogt, %37, %38 : vector<4x1xf32>
    %cst_15 = arith.constant 0.000000e+00 : f32
    %40 = vector.broadcast %cst_15 : f32 to vector<4x1xf32>
    %41 = arith.select %39, %36, %40 : vector<4x1xi1>, vector<4x1xf32>
    %42 = arith.mulf %9, %9 : vector<4x256xf32>
    %43 = vector.broadcast %41 : vector<4x1xf32> to vector<4x256xf32>
    %44 = arith.mulf %42, %43 : vector<4x256xf32>
    %45 = arith.addf %44, %11 : vector<4x256xf32>
    %cst_16 = arith.constant 0.000000e+00 : f32
    %46 = vector.broadcast %cst_16 : f32 to vector<4x256xf32>
    %47 = arith.maximumf %45, %46 : vector<4x256xf32>
    %c0_17 = arith.constant 0 : index
    %c0_18 = arith.constant 0 : index
    %c0_19 = arith.constant 0 : index
    %c0_20 = arith.constant 0 : index
    %48 = vector.load %arg9[%c0_17, %c0_18, %c0_19, %c0_20] : memref<1x2x4x256xf32, #tpu.memory_space<vmem>>, vector<1x1x4x256xf32>
    %49 = vector.shape_cast %48 : vector<1x1x4x256xf32> to vector<4x256xf32>
    %50 = vector.shape_cast %47 : vector<4x256xf32> to vector<1x1x4x256xf32>
    tpu.vector_store %arg9[%c0_17, %c0_18, %c0_19, %c0_20], %50 {strides = array<i32>} : memref<1x2x4x256xf32, #tpu.memory_space<vmem>>, vector<1x1x4x256xf32>,
    %cst_21 = arith.constant dense<0.000000e+00> : vector<256xf32>
    %51 = vector.multi_reduction <add>, %9, %cst_21 [0] : vector<4x256xf32> to vector<256xf32>
    %52 = vector.shape_cast %51 : vector<256xf32> to vector<1x256xf32>
    %cst_22 = arith.constant 2.500000e-01 : f32
    %53 = vector.broadcast %cst_22 : f32 to vector<1x256xf32>
    %54 = arith.mulf %52, %53 : vector<1x256xf32>
    %cst_23 = arith.constant dense<0xFF800000> : vector<256xf32>
    %55 = vector.multi_reduction <maximumf>, %9, %cst_23 [0] : vector<4x256xf32> to vector<256xf32>
    %56 = vector.shape_cast %55 : vector<256xf32> to vector<1x256xf32>
    %cst_24 = arith.constant 0.000000e+00 : f32
    %57 = vector.broadcast %cst_24 : f32 to vector<1x256xf32>
    %c0_25 = arith.constant 0 : index
    %58 = memref.load %arg7[%c0_25] : memref<1xf32, #tpu.memory_space<smem>>
    %59 = vector.broadcast %58 : f32 to vector<1x256xf32>
    %60 = arith.addf %57, %59 : vector<1x256xf32>
    %61 = vector.extract_strided_slice %54 {offsets = [0, 222], sizes = [1, 34], strides = [1, 1]} : vector<1x256xf32> to vector<1x34xf32>
    %62 = vector.extract_strided_slice %54 {offsets = [0, 0], sizes = [1, 222], strides = [1, 1]} : vector<1x256xf32> to vector<1x222xf32>
    %63 = tpu.concatenate %61, %62 in 1 : vector<1x34xf32>, vector<1x222xf32> -> vector<1x256xf32>
    %64 = vector.extract_strided_slice %56 {offsets = [0, 222], sizes = [1, 34], strides = [1, 1]} : vector<1x256xf32> to vector<1x34xf32>
    %65 = vector.extract_strided_slice %56 {offsets = [0, 0], sizes = [1, 222], strides = [1, 1]} : vector<1x256xf32> to vector<1x222xf32>
    %66 = tpu.concatenate %64, %65 in 1 : vector<1x34xf32>, vector<1x222xf32> -> vector<1x256xf32>
    %c0_26 = arith.constant 0 : index
    %c0_27 = arith.constant 0 : index
    %67 = vector.load %arg8[%c0_26, %c0_27] : memref<9x256xf32, #tpu.memory_space<vmem>>, vector<1x256xf32>
    %c0_28 = arith.constant 0 : index
    %c0_29 = arith.constant 0 : index
    %68 = memref.load %arg6[%c0_28, %c0_29] : memref<2x9xf32, #tpu.memory_space<smem>>
    %69 = vector.broadcast %68 : f32 to vector<1x256xf32>
    %70 = arith.mulf %69, %63 : vector<1x256xf32>
    %c1_30 = arith.constant 1 : index
    %c0_31 = arith.constant 0 : index
    %71 = memref.load %arg6[%c1_30, %c0_31] : memref<2x9xf32, #tpu.memory_space<smem>>
    %72 = vector.broadcast %71 : f32 to vector<1x256xf32>
    %73 = arith.mulf %72, %66 : vector<1x256xf32>
    %74 = arith.addf %70, %73 : vector<1x256xf32>
    %75 = arith.mulf %67, %74 : vector<1x256xf32>
    %76 = arith.addf %60, %75 : vector<1x256xf32>
    %77 = vector.extract_strided_slice %54 {offsets = [0, 224], sizes = [1, 32], strides = [1, 1]} : vector<1x256xf32> to vector<1x32xf32>
    %78 = vector.extract_strided_slice %54 {offsets = [0, 0], sizes = [1, 224], strides = [1, 1]} : vector<1x256xf32> to vector<1x224xf32>
    %79 = tpu.concatenate %77, %78 in 1 : vector<1x32xf32>, vector<1x224xf32> -> vector<1x256xf32>
    %80 = vector.extract_strided_slice %56 {offsets = [0, 224], sizes = [1, 32], strides = [1, 1]} : vector<1x256xf32> to vector<1x32xf32>
    %81 = vector.extract_strided_slice %56 {offsets = [0, 0], sizes = [1, 224], strides = [1, 1]} : vector<1x256xf32> to vector<1x224xf32>
    %82 = tpu.concatenate %80, %81 in 1 : vector<1x32xf32>, vector<1x224xf32> -> vector<1x256xf32>
    %c1_32 = arith.constant 1 : index
    %c0_33 = arith.constant 0 : index
    %83 = vector.load %arg8[%c1_32, %c0_33] : memref<9x256xf32, #tpu.memory_space<vmem>>, vector<1x256xf32>
    %c0_34 = arith.constant 0 : index
    %c1_35 = arith.constant 1 : index
    %84 = memref.load %arg6[%c0_34, %c1_35] : memref<2x9xf32, #tpu.memory_space<smem>>
    %85 = vector.broadcast %84 : f32 to vector<1x256xf32>
    %86 = arith.mulf %85, %79 : vector<1x256xf32>
    %c1_36 = arith.constant 1 : index
    %c1_37 = arith.constant 1 : index
    %87 = memref.load %arg6[%c1_36, %c1_37] : memref<2x9xf32, #tpu.memory_space<smem>>
    %88 = vector.broadcast %87 : f32 to vector<1x256xf32>
    %89 = arith.mulf %88, %82 : vector<1x256xf32>
    %90 = arith.addf %86, %89 : vector<1x256xf32>
    %91 = arith.mulf %83, %90 : vector<1x256xf32>
    %92 = arith.addf %76, %91 : vector<1x256xf32>
    %93 = vector.extract_strided_slice %54 {offsets = [0, 226], sizes = [1, 30], strides = [1, 1]} : vector<1x256xf32> to vector<1x30xf32>
    %94 = vector.extract_strided_slice %54 {offsets = [0, 0], sizes = [1, 226], strides = [1, 1]} : vector<1x256xf32> to vector<1x226xf32>
    %95 = tpu.concatenate %93, %94 in 1 : vector<1x30xf32>, vector<1x226xf32> -> vector<1x256xf32>
    %96 = vector.extract_strided_slice %56 {offsets = [0, 226], sizes = [1, 30], strides = [1, 1]} : vector<1x256xf32> to vector<1x30xf32>
    %97 = vector.extract_strided_slice %56 {offsets = [0, 0], sizes = [1, 226], strides = [1, 1]} : vector<1x256xf32> to vector<1x226xf32>
    %98 = tpu.concatenate %96, %97 in 1 : vector<1x30xf32>, vector<1x226xf32> -> vector<1x256xf32>
    %c2_38 = arith.constant 2 : index
    %c0_39 = arith.constant 0 : index
    %99 = vector.load %arg8[%c2_38, %c0_39] : memref<9x256xf32, #tpu.memory_space<vmem>>, vector<1x256xf32>
    %c0_40 = arith.constant 0 : index
    %c2_41 = arith.constant 2 : index
    %100 = memref.load %arg6[%c0_40, %c2_41] : memref<2x9xf32, #tpu.memory_space<smem>>
    %101 = vector.broadcast %100 : f32 to vector<1x256xf32>
    %102 = arith.mulf %101, %95 : vector<1x256xf32>
    %c1_42 = arith.constant 1 : index
    %c2_43 = arith.constant 2 : index
    %103 = memref.load %arg6[%c1_42, %c2_43] : memref<2x9xf32, #tpu.memory_space<smem>>
    %104 = vector.broadcast %103 : f32 to vector<1x256xf32>
    %105 = arith.mulf %104, %98 : vector<1x256xf32>
    %106 = arith.addf %102, %105 : vector<1x256xf32>
    %107 = arith.mulf %99, %106 : vector<1x256xf32>
    %108 = arith.addf %92, %107 : vector<1x256xf32>
    %109 = vector.extract_strided_slice %54 {offsets = [0, 254], sizes = [1, 2], strides = [1, 1]} : vector<1x256xf32> to vector<1x2xf32>
    %110 = vector.extract_strided_slice %54 {offsets = [0, 0], sizes = [1, 254], strides = [1, 1]} : vector<1x256xf32> to vector<1x254xf32>
    %111 = tpu.concatenate %109, %110 in 1 : vector<1x2xf32>, vector<1x254xf32> -> vector<1x256xf32>
    %112 = vector.extract_strided_slice %56 {offsets = [0, 254], sizes = [1, 2], strides = [1, 1]} : vector<1x256xf32> to vector<1x2xf32>
    %113 = vector.extract_strided_slice %56 {offsets = [0, 0], sizes = [1, 254], strides = [1, 1]} : vector<1x256xf32> to vector<1x254xf32>
    %114 = tpu.concatenate %112, %113 in 1 : vector<1x2xf32>, vector<1x254xf32> -> vector<1x256xf32>
    %c3 = arith.constant 3 : index
    %c0_44 = arith.constant 0 : index
    %115 = vector.load %arg8[%c3, %c0_44] : memref<9x256xf32, #tpu.memory_space<vmem>>, vector<1x256xf32>
    %c0_45 = arith.constant 0 : index
    %c3_46 = arith.constant 3 : index
    %116 = memref.load %arg6[%c0_45, %c3_46] : memref<2x9xf32, #tpu.memory_space<smem>>
    %117 = vector.broadcast %116 : f32 to vector<1x256xf32>
    %118 = arith.mulf %117, %111 : vector<1x256xf32>
    %c1_47 = arith.constant 1 : index
    %c3_48 = arith.constant 3 : index
    %119 = memref.load %arg6[%c1_47, %c3_48] : memref<2x9xf32, #tpu.memory_space<smem>>
    %120 = vector.broadcast %119 : f32 to vector<1x256xf32>
    %121 = arith.mulf %120, %114 : vector<1x256xf32>
    %122 = arith.addf %118, %121 : vector<1x256xf32>
    %123 = arith.mulf %115, %122 : vector<1x256xf32>
    %124 = arith.addf %108, %123 : vector<1x256xf32>
    %c4 = arith.constant 4 : index
    %c0_49 = arith.constant 0 : index
    %125 = vector.load %arg8[%c4, %c0_49] : memref<9x256xf32, #tpu.memory_space<vmem>>, vector<1x256xf32>
    %c0_50 = arith.constant 0 : index
    %c4_51 = arith.constant 4 : index
    %126 = memref.load %arg6[%c0_50, %c4_51] : memref<2x9xf32, #tpu.memory_space<smem>>
    %127 = vector.broadcast %126 : f32 to vector<1x256xf32>
    %128 = arith.mulf %127, %54 : vector<1x256xf32>
    %c1_52 = arith.constant 1 : index
    %c4_53 = arith.constant 4 : index
    %129 = memref.load %arg6[%c1_52, %c4_53] : memref<2x9xf32, #tpu.memory_space<smem>>
    %130 = vector.broadcast %129 : f32 to vector<1x256xf32>
    %131 = arith.mulf %130, %56 : vector<1x256xf32>
    %132 = arith.addf %128, %131 : vector<1x256xf32>
    %133 = arith.mulf %125, %132 : vector<1x256xf32>
    %134 = arith.addf %124, %133 : vector<1x256xf32>
    %135 = vector.extract_strided_slice %54 {offsets = [0, 2], sizes = [1, 254], strides = [1, 1]} : vector<1x256xf32> to vector<1x254xf32>
    %136 = vector.extract_strided_slice %54 {offsets = [0, 0], sizes = [1, 2], strides = [1, 1]} : vector<1x256xf32> to vector<1x2xf32>
    %137 = tpu.concatenate %135, %136 in 1 : vector<1x254xf32>, vector<1x2xf32> -> vector<1x256xf32>
    %138 = vector.extract_strided_slice %56 {offsets = [0, 2], sizes = [1, 254], strides = [1, 1]} : vector<1x256xf32> to vector<1x254xf32>
    %139 = vector.extract_strided_slice %56 {offsets = [0, 0], sizes = [1, 2], strides = [1, 1]} : vector<1x256xf32> to vector<1x2xf32>
    %140 = tpu.concatenate %138, %139 in 1 : vector<1x254xf32>, vector<1x2xf32> -> vector<1x256xf32>
    %c5 = arith.constant 5 : index
    %c0_54 = arith.constant 0 : index
    %141 = vector.load %arg8[%c5, %c0_54] : memref<9x256xf32, #tpu.memory_space<vmem>>, vector<1x256xf32>
    %c0_55 = arith.constant 0 : index
    %c5_56 = arith.constant 5 : index
    %142 = memref.load %arg6[%c0_55, %c5_56] : memref<2x9xf32, #tpu.memory_space<smem>>
    %143 = vector.broadcast %142 : f32 to vector<1x256xf32>
    %144 = arith.mulf %143, %137 : vector<1x256xf32>
    %c1_57 = arith.constant 1 : index
    %c5_58 = arith.constant 5 : index
    %145 = memref.load %arg6[%c1_57, %c5_58] : memref<2x9xf32, #tpu.memory_space<smem>>
    %146 = vector.broadcast %145 : f32 to vector<1x256xf32>
    %147 = arith.mulf %146, %140 : vector<1x256xf32>
    %148 = arith.addf %144, %147 : vector<1x256xf32>
    %149 = arith.mulf %141, %148 : vector<1x256xf32>
    %150 = arith.addf %134, %149 : vector<1x256xf32>
    %151 = vector.extract_strided_slice %54 {offsets = [0, 30], sizes = [1, 226], strides = [1, 1]} : vector<1x256xf32> to vector<1x226xf32>
    %152 = vector.extract_strided_slice %54 {offsets = [0, 0], sizes = [1, 30], strides = [1, 1]} : vector<1x256xf32> to vector<1x30xf32>
    %153 = tpu.concatenate %151, %152 in 1 : vector<1x226xf32>, vector<1x30xf32> -> vector<1x256xf32>
    %154 = vector.extract_strided_slice %56 {offsets = [0, 30], sizes = [1, 226], strides = [1, 1]} : vector<1x256xf32> to vector<1x226xf32>
    %155 = vector.extract_strided_slice %56 {offsets = [0, 0], sizes = [1, 30], strides = [1, 1]} : vector<1x256xf32> to vector<1x30xf32>
    %156 = tpu.concatenate %154, %155 in 1 : vector<1x226xf32>, vector<1x30xf32> -> vector<1x256xf32>
    %c6 = arith.constant 6 : index
    %c0_59 = arith.constant 0 : index
    %157 = vector.load %arg8[%c6, %c0_59] : memref<9x256xf32, #tpu.memory_space<vmem>>, vector<1x256xf32>
    %c0_60 = arith.constant 0 : index
    %c6_61 = arith.constant 6 : index
    %158 = memref.load %arg6[%c0_60, %c6_61] : memref<2x9xf32, #tpu.memory_space<smem>>
    %159 = vector.broadcast %158 : f32 to vector<1x256xf32>
    %160 = arith.mulf %159, %153 : vector<1x256xf32>
    %c1_62 = arith.constant 1 : index
    %c6_63 = arith.constant 6 : index
    %161 = memref.load %arg6[%c1_62, %c6_63] : memref<2x9xf32, #tpu.memory_space<smem>>
    %162 = vector.broadcast %161 : f32 to vector<1x256xf32>
    %163 = arith.mulf %162, %156 : vector<1x256xf32>
    %164 = arith.addf %160, %163 : vector<1x256xf32>
    %165 = arith.mulf %157, %164 : vector<1x256xf32>
    %166 = arith.addf %150, %165 : vector<1x256xf32>
    %167 = vector.extract_strided_slice %54 {offsets = [0, 32], sizes = [1, 224], strides = [1, 1]} : vector<1x256xf32> to vector<1x224xf32>
    %168 = vector.extract_strided_slice %54 {offsets = [0, 0], sizes = [1, 32], strides = [1, 1]} : vector<1x256xf32> to vector<1x32xf32>
    %169 = tpu.concatenate %167, %168 in 1 : vector<1x224xf32>, vector<1x32xf32> -> vector<1x256xf32>
    %170 = vector.extract_strided_slice %56 {offsets = [0, 32], sizes = [1, 224], strides = [1, 1]} : vector<1x256xf32> to vector<1x224xf32>
    %171 = vector.extract_strided_slice %56 {offsets = [0, 0], sizes = [1, 32], strides = [1, 1]} : vector<1x256xf32> to vector<1x32xf32>
    %172 = tpu.concatenate %170, %171 in 1 : vector<1x224xf32>, vector<1x32xf32> -> vector<1x256xf32>
    %c7 = arith.constant 7 : index
    %c0_64 = arith.constant 0 : index
    %173 = vector.load %arg8[%c7, %c0_64] : memref<9x256xf32, #tpu.memory_space<vmem>>, vector<1x256xf32>
    %c0_65 = arith.constant 0 : index
    %c7_66 = arith.constant 7 : index
    %174 = memref.load %arg6[%c0_65, %c7_66] : memref<2x9xf32, #tpu.memory_space<smem>>
    %175 = vector.broadcast %174 : f32 to vector<1x256xf32>
    %176 = arith.mulf %175, %169 : vector<1x256xf32>
    %c1_67 = arith.constant 1 : index
    %c7_68 = arith.constant 7 : index
    %177 = memref.load %arg6[%c1_67, %c7_68] : memref<2x9xf32, #tpu.memory_space<smem>>
    %178 = vector.broadcast %177 : f32 to vector<1x256xf32>
    %179 = arith.mulf %178, %172 : vector<1x256xf32>
    %180 = arith.addf %176, %179 : vector<1x256xf32>
    %181 = arith.mulf %173, %180 : vector<1x256xf32>
    %182 = arith.addf %166, %181 : vector<1x256xf32>
    %183 = vector.extract_strided_slice %54 {offsets = [0, 34], sizes = [1, 222], strides = [1, 1]} : vector<1x256xf32> to vector<1x222xf32>
    %184 = vector.extract_strided_slice %54 {offsets = [0, 0], sizes = [1, 34], strides = [1, 1]} : vector<1x256xf32> to vector<1x34xf32>
    %185 = tpu.concatenate %183, %184 in 1 : vector<1x222xf32>, vector<1x34xf32> -> vector<1x256xf32>
    %186 = vector.extract_strided_slice %56 {offsets = [0, 34], sizes = [1, 222], strides = [1, 1]} : vector<1x256xf32> to vector<1x222xf32>
    %187 = vector.extract_strided_slice %56 {offsets = [0, 0], sizes = [1, 34], strides = [1, 1]} : vector<1x256xf32> to vector<1x34xf32>
    %188 = tpu.concatenate %186, %187 in 1 : vector<1x222xf32>, vector<1x34xf32> -> vector<1x256xf32>
    %c8 = arith.constant 8 : index
    %c0_69 = arith.constant 0 : index
    %189 = vector.load %arg8[%c8, %c0_69] : memref<9x256xf32, #tpu.memory_space<vmem>>, vector<1x256xf32>
    %c0_70 = arith.constant 0 : index
    %c8_71 = arith.constant 8 : index
    %190 = memref.load %arg6[%c0_70, %c8_71] : memref<2x9xf32, #tpu.memory_space<smem>>
    %191 = vector.broadcast %190 : f32 to vector<1x256xf32>
    %192 = arith.mulf %191, %185 : vector<1x256xf32>
    %c1_72 = arith.constant 1 : index
    %c8_73 = arith.constant 8 : index
    %193 = memref.load %arg6[%c1_72, %c8_73] : memref<2x9xf32, #tpu.memory_space<smem>>
    %194 = vector.broadcast %193 : f32 to vector<1x256xf32>
    %195 = arith.mulf %194, %188 : vector<1x256xf32>
    %196 = arith.addf %192, %195 : vector<1x256xf32>
    %197 = arith.mulf %189, %196 : vector<1x256xf32>
    %198 = arith.addf %182, %197 : vector<1x256xf32>
    %199 = arith.negf %198 : vector<1x256xf32>
    %200 = math.exp %199 : vector<1x256xf32>
    %cst_74 = arith.constant 1.000000e+00 : f32
    %201 = vector.broadcast %cst_74 : f32 to vector<1x256xf32>
    %202 = arith.addf %201, %200 : vector<1x256xf32>
    %203 = arith.divf %201, %202 : vector<1x256xf32>
    %204 = math.absf %203 : vector<1x256xf32>
    %cst_75 = arith.constant 2.000000e-01 : f32
    %205 = vector.broadcast %cst_75 : f32 to vector<1x256xf32>
    %206 = arith.cmpf ogt, %204, %205 : vector<1x256xf32>
    %cst_76 = arith.constant 0.000000e+00 : f32
    %207 = vector.broadcast %cst_76 : f32 to vector<1x256xf32>
    %208 = arith.select %206, %203, %207 : vector<1x256xi1>, vector<1x256xf32>
    %209 = vector.broadcast %208 : vector<1x256xf32> to vector<4x256xf32>
    %210 = arith.mulf %209, %9 : vector<4x256xf32>
    %211 = arith.addf %210, %11 : vector<4x256xf32>
    %cst_77 = arith.constant 0.000000e+00 : f32
    %212 = vector.broadcast %cst_77 : f32 to vector<4x256xf32>
    %213 = arith.maximumf %211, %212 : vector<4x256xf32>
    %c0_78 = arith.constant 0 : index
    %c1_79 = arith.constant 1 : index
    %c0_80 = arith.constant 0 : index
    %c0_81 = arith.constant 0 : index
    %214 = vector.load %arg9[%c0_78, %c1_79, %c0_80, %c0_81] : memref<1x2x4x256xf32, #tpu.memory_space<vmem>>, vector<1x1x4x256xf32>
    %215 = vector.shape_cast %214 : vector<1x1x4x256xf32> to vector<4x256xf32>
    %216 = vector.shape_cast %213 : vector<4x256xf32> to vector<1x1x4x256xf32>
    tpu.vector_store %arg9[%c0_78, %c1_79, %c0_80, %c0_81], %216 {strides = array<i32>} : memref<1x2x4x256xf32, #tpu.memory_space<vmem>>, vector<1x1x4x256xf32>,
    return
  }
  func.func @transform_0(%arg0: i32) -> (i32, i32, i32) {
    %c0_i32 = arith.constant 0 : i32
    %c0_i32_0 = arith.constant 0 : i32
    %c0_i32_1 = arith.constant 0 : i32
    return %arg0, %c0_i32, %c0_i32_0 : i32, i32, i32
  }
  func.func @transform_1(%arg0: i32) -> (i32, i32, i32) {
    %c0_i32 = arith.constant 0 : i32
    %c0_i32_0 = arith.constant 0 : i32
    %c0_i32_1 = arith.constant 0 : i32
    return %arg0, %c0_i32, %c0_i32_0 : i32, i32, i32
  }
  func.func @transform_2(%arg0: i32) -> (i32, i32) {
    %c0_i32 = arith.constant 0 : i32
    %c0_i32_0 = arith.constant 0 : i32
    %c0_i32_1 = arith.constant 0 : i32
    return %c0_i32, %c0_i32_0 : i32, i32
  }
  func.func @transform_3(%arg0: i32) -> (i32, i32) {
    %c0_i32 = arith.constant 0 : i32
    %c0_i32_0 = arith.constant 0 : i32
    %c0_i32_1 = arith.constant 0 : i32
    return %c0_i32, %c0_i32_0 : i32, i32
  }
  func.func @transform_4(%arg0: i32) -> i32 {
    %c0_i32 = arith.constant 0 : i32
    %c0_i32_0 = arith.constant 0 : i32
    return %c0_i32 : i32
  }
  func.func @transform_5(%arg0: i32) -> (i32, i32) {
    %c0_i32 = arith.constant 0 : i32
    %c0_i32_0 = arith.constant 0 : i32
    %c0_i32_1 = arith.constant 0 : i32
    return %c0_i32, %c0_i32_0 : i32, i32
  }
  func.func @transform_6(%arg0: i32) -> i32 {
    %c0_i32 = arith.constant 0 : i32
    %c0_i32_0 = arith.constant 0 : i32
    return %c0_i32 : i32
  }
  func.func @transform_7(%arg0: i32) -> (i32, i32) {
    %c0_i32 = arith.constant 0 : i32
    %c0_i32_0 = arith.constant 0 : i32
    %c0_i32_1 = arith.constant 0 : i32
    return %c0_i32, %c0_i32_0 : i32, i32
  }
  func.func @transform_8(%arg0: i32) -> (i32, i32, i32, i32) {
    %c0_i32 = arith.constant 0 : i32
    %c0_i32_0 = arith.constant 0 : i32
    %c0_i32_1 = arith.constant 0 : i32
    %c0_i32_2 = arith.constant 0 : i32
    return %arg0, %c0_i32, %c0_i32_0, %c0_i32_1 : i32, i32, i32, i32
  }
}

</mosaic_0001>

<bundles_post_ra>
// kernel: basic_block_forward.3
= control target key start
LH: loop header
LB: loop body
LE: loop exit
PB: predicated region body
PF: predicated region fallthrough
CT: control target
= control target key end

     0   :  { %s1533_s0 = inlined_call_operand.vmem [shape: f32[2,4,256], index: 0, kind: input, shape index: {}]   ;;  %s1534_s1 = inlined_call_operand.vmem [shape: f32[2,4,256], index: 1, kind: input, shape index: {}]   ;;  %s1535_s2 = inlined_call_operand.vmem [shape: f32[4,1], index: 2, kind: input, shape index: {}]   ;;  %s1536_s3 = inlined_call_operand.vmem [shape: f32[4,1], index: 3, kind: input, shape index: {}]   ;;  %s1537_s4 = inlined_call_operand.vmem [shape: f32[3], index: 4, kind: input, shape index: {}]   ;;  %s1538_s5 = inlined_call_operand.vmem [shape: f32[2,9], index: 5, kind: input, shape index: {}]   ;;  %s1539_s6 = inlined_call_operand.<no memory space> [shape: f32[1], index: 6, kind: input, shape index: {}]   ;;  %s1540_s7 = inlined_call_operand.vmem [shape: f32[9,256], index: 7, kind: input, shape index: {}]   ;;  %s1541_s8 = inlined_call_operand.vmem [shape: f32[2,2,4,256], index: 8, kind: output, shape index: {}]  }
   0x1   :  { %13 = sst [smem:[#allocation2]] %s1539_s6 }
   0x2   :  { %14 = vsyncpa [#allocation4], 0 }
   0x3   :  { %15 = vsyncpa [#allocation6], 0  ;;  %s1246_s29 = smov 0  }
   0x4 LB: > { %s1252_s30 = sadd.s32 4294967295, %s1183_s29   ;;  %p1041_p0 = scmp.ge.s32.totalorder %s1183_s29, 1  ;;  %s1183_s29 = sphi %s1246_s29, %s21_s29  }
   0x5   : > { %p230_p1 = scmp.lt.s32.totalorder %s1183_s29, 3  ;;  %s249_s10 = sshll.u32 %s1537_s4, 4  ;;  %s250_s10 = int_to_ptr.vmem [resolvable:$true] %s249_s10 }
   0x6   : > { %p1542_p3 = scmp.eq.s32.totalorder %s1252_s30, 0  ;;  %s260_s14 = sshll.u32 %s1538_s5, 4  ;;  %s261_s14 = int_to_ptr.vmem [resolvable:$true] %s260_s14 }
   0x7   : > { %p1259_p2 = pnand %p1041_p0, %p230_p1  ;;  %s1139_s16 = scalar_lea.vmem %s250_s10, 16 }
   0x8   : > { %p1140_p6 = scmp.ne.s32.totalorder %s250_s10, %s1139_s16  ;;  %p1147_p10 = scmp.lt.s32.totalorder %s250_s10, %s250_s10 }
   0x9   : > { %s1544_s11 = scalar_select %p1259_p2, 1, 0 }
   0xa   : > { %p1097_p4 = pneg %p1259_p2  ;;  %p1148_p11 = scmp.lt.s32.totalorder %s1139_s16, %s1139_s16 }
   0xc   : > { %p1271_p5 = pnand %p1542_p3, %p1097_p4  ;;  %p1149_p12 = por %p1148_p11, %p1147_p10 }
   0xe   : > { %p1141_p7 = pneg %p1271_p5 }
  0x10   : > { %p1142_p8 = pnand %p1141_p7, %p1140_p6 }
  0x12   : > { %p1143_p9 = pneg %p1142_p8 }
  0x14   : > { %p1150_p13 = pnand %p1149_p12, %p1143_p9 }
  0x16   : > { %1153 = shalt.err (!%p1150_p13)
}
  0x17   : > { %s1185_s17 = smov [#allocation3]   ;;  %s1154_s18 = scalar_lea.vmem %s261_s14, 32 }
  0x18   : > { %1100 = dma.vmem_to_smem (!%p1271_p5), %s250_s10, 16, %s1185_s17, [#allocation4]  }
  0x19   : > { %p1155_p0 = scmp.ne.s32.totalorder %s261_s14, %s1154_s18  ;;  %p1162_p3 = scmp.lt.s32.totalorder %s261_s14, %s261_s14 }
  0x1a   : > { %p1163_p2 = scmp.lt.s32.totalorder %s1154_s18, %s1154_s18 }
  0x1b   : > { %p1157_p1 = pnand %p1155_p0, %p1141_p7 }
  0x1c   : > { %p1164_p6 = por %p1163_p2, %p1162_p3 }
  0x1d   : > { %p1158_p4 = pneg %p1157_p1 }
  0x1f   : > { %p1165_p8 = pnand %p1164_p6, %p1158_p4 }
  0x21   : > { %1168 = shalt.err (!%p1165_p8)
}
  0x22   : > { %s1186_s19 = smov [#allocation5]   ;;  %p1546_p9 = scmp.ne.s32.totalorder %s1544_s11, 0 }
  0x23   : > { %1103 = dma.vmem_to_smem (!%p1271_p5), %s261_s14, 32, %s1186_s19, [#allocation6]  }
  0x24   : > { %295 = sbr.rel (%p1546_p9) target bundleno = 515 (0x203), region = 52  ;;  %p1547_p10 = scmp.eq.s32.totalorder (!%p1546_p9), %s1252_s30, 0 }
  0x2b   : > { %1174 = dma.done.wait (%p1547_p10), [#allocation4], 16   ;;  %p1548_p11 = pmov %p1547_p10 }
  0x2c   : > { %p1549_p7 = pmov %p1547_p10 }
  0x2d   : > { %1176 = vsyncadd (%p1548_p11), [#allocation4], 4294967280 }
  0x2e   : > { %1178 = dma.done.wait (%p1549_p7), [#allocation6], 32   ;;  %p1550_p2 = pmov %p1549_p7 }
  0x30   : > { %1180 = vsyncadd (%p1550_p2), [#allocation6], 4294967264 }
  0x31   : > { %305 = sfence }
  0x32   : > { %v355_v0 = vld [vmem:[%s1535_s2] sm:$0xf]  ;;  %v1187_v1 = vmov 0   ;;  %p339_p3 = scmp.lt.s32.totalorder %s1252_s30, 1  ;;  %v1188_v3 = vmov 839922192   ;;  %v363_v5 = vlaneseq }
  0x33   : > { %1129 = vset.pattern.permute.xlu0 %v1187_v1  ;;  %v369_v2 = vld [vmem:[%s1536_s3] sm:$0xf]  ;;  %v361_v4 = vunpack.c.l.s4 %v1188_v3  ;;  %vm388_vm0 = vcmask 1043456   ;;  %s1324_s28 = sld [smem:[#allocation5 + $0x4]]  ;;  %s1189_s6 = smov 34   ;;  %vm398_vm1 = vcmask 1040384  }
  0x34   : > { %358 = vperm.xlu0 %1129, %v355_v0   ;;  %s1552_s30 = smov (!%p339_p3, %s1252_s30), 1  ;;  %v1301_v7 = vshrl.u32 %v363_v5, 7  ;;  %s1069_s9 = sld [smem:[#allocation5 + $0x84]]  ;;  %vm402_vm2 = vcmask 1042432   ;;  %vm479_vm3 = vcmask 277504   ;;  %vm531_vm4 = vcmask 261120  }
  0x35   : > { %v362_v6 = vunpack.c.0.s8 %v361_v4  ;;  %s1086_s24 = sshll.u32 %s1552_s30, 3  ;;  %s1190_s10 = smov 126   ;;  %vm582_vm5 = vcmask 244736   ;;  %vm633_vm6 = vcmask 15360   ;;  %vm715_vm7 = vcmask 1031168  }
  0x36   : > { %s343_s27 = scalar_lea.vmem %s1533_s0, %s1086_s24  ;;  %s1191_s11 = smov 98   ;;  %vm766_vm9 = vcmask 801792   ;;  %vm817_vm10 = vcmask 785408   ;;  %vm868_vm11 = vcmask 769024  }
  0x37   : > { %v1305_v8 = vsub.s32 %v362_v6, %v1301_v7  ;;  %v354_v11 = vld [vmem:[%s343_s27] sm:$0xff]  ;;  %s1192_s12 = smov 32   ;;  %s1193_s13 = smov 30  }
  0x38   : > { %372 = vperm.xlu0 %1129, %v369_v2   ;;  %s1194_s14 = smov 2   ;;  %s1195_s15 = smov 96  }
  0x39   : > { %v682_v45 = vstv %s1324_s28  ;;  %s1196_s16 = smov 94   ;;  %s404_s17 = sld [smem:[#allocation3]] }
  0x3a   : > { %v686_v48 = vstv %s1069_s9  ;;  %s1054_s18 = sld [smem:[#allocation3 + $0x1]]  ;;  %s1055_s19 = sld [smem:[#allocation3 + $0x2]] }
  0x3b   : > { %s1357_s20 = sld [smem:[#allocation5 + $0x80]]  ;;  %s1359_s21 = sld [smem:[#allocation5 + $0x81]] }
  0x3c   : > { %s1361_s22 = sld [smem:[#allocation5 + $0x1]]  ;;  %s1363_s23 = sld [smem:[#allocation5 + $0x2]] }
  0x3d   : > { %s1365_s25 = sld [smem:[#allocation5 + $0x82]]  ;;  %s1369_s26 = sld [smem:[#allocation5 + $0x83]] }
  0x3e   : > { %s1371_s27 = sld [smem:[#allocation5 + $0x3]]  ;;  %s1373_s28 = sld [smem:[#allocation5]] }
  0x3f   : > { %v405_v2 = vstv %s404_s17  ;;  %s1393_s9 = sld [smem:[#allocation5 + $0x85]]  ;;  %s348_s17 = scalar_lea.vmem %s1534_s1, %s1086_s24 }
  0x40   : > { %v408_v3 = vstv %s1054_s18  ;;  %s1088_s18 = sshll.u32 %s1552_s30, 4 }
  0xb3   : > { %v359_v9 = vpop.permute.xlu0 %358 }
  0xb4   : > { %v366_v10 = vrot.slane %v359_v9, %v1305_v8  ;;  %v412_v9 = vstv %s1055_s19 }
  0xb6   : > { %v368_v13 = vmul.f32 %v366_v10, %v354_v11 }
  0xb7   : > { %v373_v12 = vpop.permute.xlu0 %372 }
  0xb8   : > { %v380_v14 = vrot.slane %v373_v12, %v1305_v8 }
  0xba   : > { %v382_v15 = vadd.f32 %v380_v14, %v368_v13 }
  0xbc   : > { %v1314_v16 = vmax.f32 %v382_v15, 0.0 }
  0xbe   : > { %v1318_v17 = vcombine.high %v1314_v16, %v1314_v16  ;;  %v389_v18 = vsel %vm388_vm0, %v1314_v16, 0.0  ;;  %v455_v19 = vsel %vm388_vm0, %v1314_v16, -inf }
  0xbf   : > { %v441_v20 = vrot.slane %v389_v18, 4  ;;  %v456_v21 = vrot.slane %v455_v19, 4 }
  0xc0   : > { %v390_v22 = vsel %vm388_vm0, %v1318_v17, 0.0  ;;  %v462_v23 = vsel %vm388_vm0, %v1318_v17, -inf }
  0xc1   : > { %v391_v24 = vadd.f32 %v390_v22, %v389_v18  ;;  %v442_v25 = vadd.f32 %v441_v20, %v389_v18  ;;  %v447_v26 = vrot.slane %v390_v22, 4  ;;  %v457_v27 = vmax.f32 %v455_v19, %v456_v21 }
  0xc2   : > { %v463_v28 = vrot.slane %v462_v23, 4 }
  0xc3   : > { %v443_v29 = vrot.slane %v442_v25, 2  ;;  %v448_v30 = vadd.f32 %v447_v26, %v390_v22  ;;  %v458_v31 = vrot.slane %v457_v27, 2  ;;  %392 = vadd.xlane.f32.xlu1 %v391_v24 }
  0xc4   : > { %v464_v32 = vmax.f32 %v462_v23, %v463_v28 }
  0xc5   : > { %v444_v33 = vadd.f32 %v443_v29, %v442_v25  ;;  %v449_v34 = vrot.slane %v448_v30, 2  ;;  %v459_v35 = vmax.f32 %v457_v27, %v458_v31  ;;  %v1197_v27 = vmov 1966171168  }
  0xc6   : > { %v465_v36 = vrot.slane %v464_v32, 2  ;;  %v510_v28 = vunpack.c.l.s4 %v1197_v27 }
  0xc7   : > { %v445_v37 = vrot.slane %v444_v33, 1  ;;  %v450_v38 = vadd.f32 %v449_v34, %v448_v30  ;;  %v460_v39 = vrot.slane %v459_v35, 1 }
  0xc8   : > { %v466_v40 = vmax.f32 %v464_v32, %v465_v36  ;;  %v511_v31 = vunpack.c.0.s8 %v510_v28 }
  0xc9   : > { %v446_v41 = vadd.f32 %v445_v37, %v444_v33  ;;  %v451_v42 = vrot.slane %v450_v38, 1  ;;  %v461_v43 = vmax.f32 %v459_v35, %v460_v39  ;;  %v501_v37 = vstv %s1357_s20  ;;  %s353_s20 = scalar_lea.vmem %s1541_s8, %s1088_s18 }
  0xca   : > { %v467_v44 = vrot.slane %v466_v40, 1  ;;  %v1376_v36 = vsub.s32 %v511_v31, %v1301_v7  ;;  %v548_v39 = vstv %s1361_s22  ;;  %s1473_s22 = sld [smem:[#allocation5 + $0x88]] }
  0xcb   : > { %v452_v46 = vadd.f32 %v451_v42, %v450_v38  ;;  %v453_v47 = vmul.f32 0.25, %v446_v41  ;;  %489 = vrot.lane.b32.xlu0 %v461_v43, %s1189_s6  ;;  %v687_v52 = vmul.f32 %v686_v48, %v461_v43  ;;  %v552_v38 = vstv %s1359_s21  ;;  %s1470_s21 = sld [smem:[#allocation5 + $0x8]] }
  0xcc   : > { %v468_v49 = vmax.f32 %v466_v40, %v467_v44 }
  0xcd   : > { %v454_v50 = vmul.f32 0.25, %v452_v46  ;;  %v683_v51 = vmul.f32 %v682_v45, %v453_v47  ;;  %v603_v46 = vstv %s1365_s25 }
  0xce   : > { %v688_v54 = vmul.f32 %v686_v48, %v468_v49 }
  0xcf   : > { %721 = vrot.lane.b32.xlu0 %v461_v43, %s1190_s10  ;;  %v684_v53 = vmul.f32 %v682_v45, %v454_v50  ;;  %v1329_v55 = vadd.f32 %v687_v52, %v683_v51 }
  0xd1   : > { %v1331_v56 = vadd.f32 %v688_v54, %v684_v53 }
  0xd3   : > { %772 = vrot.lane.b32.xlu0 %v461_v43, %s1191_s11  ;;  %v693_v57 = vcombine.low %v1329_v55, %v1331_v56 }
  0xd4   : > { %539 = vrot.lane.b32.xlu1 %v461_v43, %s1192_s12 }
  0xd7   : > { %477 = vrot.lane.b32.xlu0 %v453_v47, %s1189_s6 }
  0xd8   : > { %590 = vrot.lane.b32.xlu1 %v461_v43, %s1193_s13 }
  0xdb   : > { %485 = vrot.lane.b32.xlu0 %v468_v49, %s1189_s6 }
  0xdc   : > { %641 = vrot.lane.b32.xlu1 %v461_v43, %s1194_s14 }
  0xdf   : > { %536 = vrot.lane.b32.xlu0 %v468_v49, %s1192_s12 }
  0xe0   : > { %529 = vrot.lane.b32.xlu1 %v453_v47, %s1192_s12 }
  0xe3   : > { %587 = vrot.lane.b32.xlu0 %v468_v49, %s1193_s13 }
  0xe4   : > { %580 = vrot.lane.b32.xlu1 %v453_v47, %s1193_s13 }
  0xe7   : > { %638 = vrot.lane.b32.xlu0 %v468_v49, %s1194_s14 }
  0xe8   : > { %631 = vrot.lane.b32.xlu1 %v453_v47, %s1194_s14 }
  0xeb   : > { %711 = vrot.lane.b32.xlu0 %v453_v47, %s1190_s10 }
  0xec   : > { %723 = vrot.lane.b32.xlu1 %v468_v49, %s1190_s10 }
  0xef   : > { %762 = vrot.lane.b32.xlu0 %v453_v47, %s1191_s11 }
  0xf0   : > { %774 = vrot.lane.b32.xlu1 %v468_v49, %s1191_s11 }
  0xf3   : > { %813 = vrot.lane.b32.xlu0 %v453_v47, %s1195_s15 }
  0xf4   : > { %473 = vrot.lane.b32.xlu1 %v454_v50, %s1189_s6  ;;  %s1395_s6 = sld [smem:[#allocation5 + $0x86]] }
  0xf7   : > { %526 = vrot.lane.b32.xlu0 %v454_v50, %s1192_s12  ;;  %s1410_s12 = sld [smem:[#allocation2]] }
  0xf8   : > { %825 = vrot.lane.b32.xlu1 %v468_v49, %s1195_s15 }
  0xfb   : > { %577 = vrot.lane.b32.xlu0 %v454_v50, %s1193_s13  ;;  %s1418_s13 = sld [smem:[#allocation5 + $0x6]] }
  0xfc   : > { %713 = vrot.lane.b32.xlu1 %v454_v50, %s1190_s10  ;;  %s1403_s10 = sld [smem:[#allocation5 + $0x5]] }
  0xff   : > { %628 = vrot.lane.b32.xlu0 %v454_v50, %s1194_s14  ;;  %s1424_s14 = sld [smem:[#allocation5 + $0x7]] }
 0x100   : > { %764 = vrot.lane.b32.xlu1 %v454_v50, %s1191_s11  ;;  %s1405_s11 = sld [smem:[#allocation5 + $0x87]] }
 0x103   : > { %823 = vrot.lane.b32.xlu0 %v461_v43, %s1195_s15 }
 0x104   : > { %815 = vrot.lane.b32.xlu1 %v454_v50, %s1195_s15 }
 0x107   : > { %864 = vrot.lane.b32.xlu0 %v453_v47, %s1196_s16 }
 0x108   : > { %866 = vrot.lane.b32.xlu1 %v454_v50, %s1196_s16 }
 0x10b   : > { %874 = vrot.lane.b32.xlu0 %v461_v43, %s1196_s16  ;;  %v599_v43 = vstv %s1363_s23 }
 0x10c   : > { %876 = vrot.lane.b32.xlu1 %v468_v49, %s1196_s16 }
 0x13d   : > { %v1341_v58 = vpop.permute.xlu0 %489 }
 0x141   : > { %v1343_v59 = vpop.permute.xlu0 %721 }
 0x145   : > { %v1345_v60 = vpop.permute.xlu0 %772 }
 0x149   : > { %v1347_v61 = vpop.permute.xlu0 %477 }
 0x14d   : > { %v1349_v62 = vpop.permute.xlu0 %485 }
 0x150   : > { %v393_v63 = vpop.xlane.xlu1 %392 }
 0x151   : > { %v394_v0 = vmul.f32 0.00390625, %v393_v63  ;;  %v537_v1 = vpop.permute.xlu0 %536 }
 0x153   : > { %v396_v4 = vrot.slane %v394_v0, 7  ;;  %v400_v5 = vrot.slane %v394_v0, 1  ;;  %v409_v14 = vmul.f32 %v408_v3, %v394_v0  ;;  %v491_v0 = vsel %vm479_vm3, %v1341_v58, %v1349_v62 }
 0x154   : > { %v540_v6 = vpop.permute.xlu1 %539  ;;  %v503_v31 = vmul.f32 %v501_v37, %v491_v0  ;;  %v784_v0 = vstv %s1418_s13 }
 0x155   : > { %v399_v10 = vsel %vm398_vm1, 0.0, %v396_v4  ;;  %v403_v11 = vsel %vm402_vm2, %v400_v5, 0.0  ;;  %v588_v12 = vpop.permute.xlu0 %587  ;;  %v541_v44 = vsel %vm531_vm4, %v540_v6, %v537_v1  ;;  %v544_v45 = vsel %vm531_vm4, %v537_v1, %v540_v6 }
 0x156   : > { %v406_v13 = vmul.f32 %v405_v2, %v399_v10  ;;  %v413_v18 = vmul.f32 %v412_v9, %v403_v11  ;;  %v654_v2 = vstv %s1369_s26  ;;  %v650_v1 = vstv %s1371_s27 }
 0x157   : > { %v497_v4 = vstv %s1373_s28  ;;  %v553_v5 = vmul.f32 %v552_v38, %v544_v45  ;;  %v554_v6 = vmul.f32 %v552_v38, %v541_v44  ;;  %v737_v44 = vstv %s1393_s9 }
 0x158   : > { %v410_v15 = vadd.f32 %v409_v14, %v406_v13  ;;  %v591_v19 = vpop.permute.xlu1 %590 }
 0x159   : > { %v1351_v20 = vpop.permute.xlu0 %638  ;;  %v592_v48 = vsel %vm582_vm5, %v591_v19, %v588_v12  ;;  %v595_v49 = vsel %vm582_vm5, %v588_v12, %v591_v19 }
 0x15a   : > { %v414_v21 = vadd.f32 %v413_v18, %v410_v15  ;;  %v604_v9 = vmul.f32 %v603_v46, %v595_v49  ;;  %v605_v10 = vmul.f32 %v603_v46, %v592_v48 }
 0x15c   : > { %v1056_v22 = vmul.f32 -1.442695, %v414_v21  ;;  %v642_v23 = vpop.permute.xlu1 %641 }
 0x15d   : > { %v1353_v24 = vpop.permute.xlu0 %711  ;;  %v643_v12 = vsel %vm633_vm6, %v642_v23, %v1351_v20  ;;  %v646_v13 = vsel %vm633_vm6, %v1351_v20, %v642_v23  ;;  %v1416_v23 = vrot.slane %v693_v57, %v1376_v36 }
 0x15e   : > { %1131 = vpow2.f32 %v1056_v22 }
 0x160   : > { %v530_v25 = vpop.permute.xlu1 %529 }
 0x161   : > { %v1355_v26 = vpop.permute.xlu0 %762 }
 0x164   : > { %v581_v29 = vpop.permute.xlu1 %580 }
 0x165   : > { %v1367_v30 = vpop.permute.xlu0 %813 }
 0x168   : > { %v1132_v32 = vpop.eup %1131  ;;  %v632_v33 = vpop.permute.xlu1 %631 }
 0x169   : > { %v418_v34 = vadd.f32 1.0, %v1132_v32  ;;  %v527_v35 = vpop.permute.xlu0 %526  ;;  %v655_v32 = vmul.f32 %v654_v2, %v646_v13 }
 0x16a   : > { %v532_v40 = vsel %vm531_vm4, %v530_v25, %v527_v35  ;;  %v535_v41 = vsel %vm531_vm4, %v527_v35, %v530_v25  ;;  %v494_v25 = vsel %vm479_vm3, %v1349_v62, %v1341_v58  ;;  %v656_v62 = vmul.f32 %v654_v2, %v643_v12 }
 0x16b   : > { %1133 = vrcp.f32 %v418_v34  ;;  %v549_v52 = vmul.f32 %v548_v39, %v535_v41  ;;  %v550_v53 = vmul.f32 %v548_v39, %v532_v40  ;;  %v502_v55 = vmul.f32 %v501_v37, %v494_v25 }
 0x16c   : > { %v1381_v42 = vpop.permute.xlu1 %723 }
 0x16d   : > { %v578_v47 = vpop.permute.xlu0 %577  ;;  %v555_v18 = vadd.f32 %v553_v5, %v549_v52  ;;  %v556_v19 = vadd.f32 %v554_v6, %v550_v53  ;;  %v725_v37 = vsel %vm715_vm7, %v1343_v59, %v1381_v42  ;;  %v729_v49 = vsel %vm715_vm7, %v1381_v42, %v1343_v59  ;;  %v495_v42 = vld [vmem:[%s1540_s7] ss:$8 sm:$0x3] }
 0x16e   : > { %v583_v50 = vsel %vm582_vm5, %v581_v29, %v578_v47  ;;  %v586_v51 = vsel %vm582_vm5, %v578_v47, %v581_v29  ;;  %v733_v47 = vstv %s1403_s10  ;;  %v470_v53 = vstv %s1410_s12 }
 0x16f   : > { %v600_v54 = vmul.f32 %v599_v43, %v586_v51  ;;  %v601_v63 = vmul.f32 %v599_v43, %v583_v50  ;;  %v559_v56 = vcombine.low %v555_v18, %v556_v19  ;;  %v738_v2 = vmul.f32 %v737_v44, %v725_v37 }
 0x170   : > { %v1389_v3 = vpop.permute.xlu1 %774  ;;  %v739_v6 = vmul.f32 %v737_v44, %v729_v49  ;;  %v707_v49 = vrot.slane %v1416_v23, %v1376_v36 }
 0x171   : > { %v629_v11 = vpop.permute.xlu0 %628  ;;  %v606_v21 = vadd.f32 %v604_v9, %v600_v54  ;;  %v607_v22 = vadd.f32 %v605_v10, %v601_v63  ;;  %v566_v48 = vrot.slane %v559_v56, %v1376_v36  ;;  %v839_v54 = vstv %s1405_s11 }
 0x172   : > { %v634_v14 = vsel %vm633_vm6, %v632_v33, %v629_v11  ;;  %v637_v15 = vsel %vm633_vm6, %v629_v11, %v632_v33  ;;  %v776_v59 = vsel %vm766_vm9, %v1345_v60, %v1389_v3 }
 0x173   : > { %v651_v27 = vmul.f32 %v650_v1, %v637_v15  ;;  %v652_v28 = vmul.f32 %v650_v1, %v634_v14  ;;  %v610_v57 = vcombine.low %v606_v21, %v607_v22  ;;  %v573_v11 = vrot.slane %v566_v48, %v1376_v36  ;;  %v1058_v14 = vld [vmem:[%s1540_s7 + $0x1] ss:$8 sm:$0x3]  ;;  %v1061_v15 = vld [vmem:[%s1540_s7 + $0x2] ss:$8 sm:$0x3] }
 0x174   : > { %v474_v20 = vpop.permute.xlu1 %473 }
 0x175   : > { %v1134_v29 = vpop.eup %1133  ;;  %v480_v58 = vsel %vm479_vm3, %v1347_v61, %v474_v20  ;;  %v483_v33 = vsel %vm479_vm3, %v474_v20, %v1347_v61  ;;  %v657_v39 = vadd.f32 %v655_v32, %v651_v27  ;;  %v658_v40 = vadd.f32 %v656_v62, %v652_v28  ;;  %v824_v19 = vpop.permute.xlu0 %823 }
 0x176   : > { %v499_v34 = vmul.f32 %v497_v4, %v480_v58  ;;  %v421_v35 = vand.u32 2147483647, %v1134_v29  ;;  %v498_v38 = vmul.f32 %v497_v4, %v483_v33  ;;  %v788_v61 = vstv %s1395_s6 }
 0x177   : > { %v617_v50 = vrot.slane %v610_v57, %v1376_v36  ;;  %v661_v52 = vcombine.low %v657_v39, %v658_v40  ;;  %v835_v27 = vstv %s1424_s14  ;;  %v789_v28 = vmul.f32 %v788_v61, %v776_v59  ;;  %v1064_v39 = vld [vmem:[%s1540_s7 + $0x3] ss:$8 sm:$0x3] }
 0x178   : > { %v505_v41 = vadd.f32 %v503_v31, %v499_v34  ;;  %v826_v43 = vpop.permute.xlu1 %825  ;;  %vm422_vm8 = vcmp.gt.f32.partialorder %v421_v35, 0.2  ;;  %v504_v45 = vadd.f32 %v502_v55, %v498_v38  ;;  %v575_v62 = vmul.f32 %v1058_v14, %v573_v11  ;;  %v1070_v11 = vld [vmem:[%s1540_s7 + $0x5] ss:$8 sm:$0x3] }
 0x179   : > { %v423_v46 = vsel %vm422_vm8, %v1134_v29, 0.0  ;;  %v624_v12 = vrot.slane %v617_v50, %v1376_v36  ;;  %v668_v18 = vrot.slane %v661_v52, %v1376_v36  ;;  %v827_v31 = vsel %vm817_vm10, %v824_v19, %v826_v43 }
 0x17a   : > { %v508_v51 = vcombine.low %v504_v45, %v505_v41  ;;  %427 = vperm.xlu0 %1129, %v423_v46   ;;  %v831_v35 = vsel %vm817_vm10, %v826_v43, %v824_v19  ;;  %v840_v41 = vmul.f32 %v839_v54, %v827_v31  ;;  %v865_v45 = vpop.permute.xlu0 %864 }
 0x17b   : > { %v626_v33 = vmul.f32 %v1061_v15, %v624_v12  ;;  %v675_v55 = vrot.slane %v668_v18, %v1376_v36 }
 0x17c   : > { %v714_v63 = vpop.permute.xlu1 %713  ;;  %v515_v1 = vrot.slane %v508_v51, %v1376_v36 }
 0x17d   : > { %v716_v4 = vsel %vm715_vm7, %v1353_v24, %v714_v63  ;;  %v720_v5 = vsel %vm715_vm7, %v714_v63, %v1353_v24  ;;  %v780_v24 = vsel %vm766_vm9, %v1389_v3, %v1345_v60  ;;  %v677_v50 = vmul.f32 %v1064_v39, %v675_v55 }
 0x17e   : > { %v734_v9 = vmul.f32 %v733_v47, %v716_v4  ;;  %v735_v10 = vmul.f32 %v733_v47, %v720_v5  ;;  %v522_v13 = vrot.slane %v515_v1, %v1376_v36  ;;  %v790_v29 = vmul.f32 %v788_v61, %v780_v24 }
 0x17f   : > { %v841_v61 = vmul.f32 %v839_v54, %v831_v35  ;;  %v886_v1 = vstv %s1470_s21  ;;  %v890_v5 = vstv %s1473_s22 }
 0x180   : > { %v740_v21 = vadd.f32 %v738_v2, %v734_v9  ;;  %v741_v22 = vadd.f32 %v739_v6, %v735_v10  ;;  %v765_v25 = vpop.permute.xlu1 %764  ;;  %v524_v20 = vmul.f32 %v522_v13, %v495_v42  ;;  %v875_v42 = vpop.permute.xlu0 %874 }
 0x181   : > { %v767_v60 = vsel %vm766_vm9, %v1355_v26, %v765_v25  ;;  %v771_v3 = vsel %vm766_vm9, %v765_v25, %v1355_v26 }
 0x182   : > { %v785_v32 = vmul.f32 %v784_v0, %v767_v60  ;;  %v786_v58 = vmul.f32 %v784_v0, %v771_v3  ;;  %v525_v34 = vadd.f32 %v524_v20, %v470_v53  ;;  %v744_v56 = vcombine.low %v740_v21, %v741_v22  ;;  %v1073_v22 = vld [vmem:[%s1540_s7 + $0x6] ss:$8 sm:$0x3]  ;;  %v1076_v60 = vld [vmem:[%s1540_s7 + $0x7] ss:$8 sm:$0x3] }
 0x184   : > { %v791_v57 = vadd.f32 %v789_v28, %v785_v32  ;;  %v792_v38 = vadd.f32 %v790_v29, %v786_v58  ;;  %v816_v26 = vpop.permute.xlu1 %815  ;;  %v576_v40 = vadd.f32 %v575_v62, %v525_v34  ;;  %v751_v51 = vrot.slane %v744_v56, %v1376_v36  ;;  %v1079_v62 = vld [vmem:[%s1540_s7 + $0x10] ss:$8 sm:$0x3] }
 0x185   : > { %v818_v44 = vsel %vm817_vm10, %v1367_v30, %v816_v26  ;;  %v822_v43 = vsel %vm817_vm10, %v816_v26, %v1367_v30  ;;  %v1067_v30 = vld [vmem:[%s1540_s7 + $0x4] ss:$8 sm:$0x3] }
 0x186   : > { %v795_v37 = vcombine.low %v791_v57, %v792_v38  ;;  %v836_v46 = vmul.f32 %v835_v27, %v818_v44  ;;  %v837_v47 = vmul.f32 %v835_v27, %v822_v43  ;;  %v627_v48 = vadd.f32 %v626_v33, %v576_v40  ;;  %v384_v44 = vld [vmem:[%s348_s17] sm:$0xff] }
 0x187   : > { %v709_v6 = vmul.f32 %v1067_v30, %v707_v49  ;;  %v758_v59 = vrot.slane %v751_v51, %v1376_v36  ;;  %v927_v40 = vsub.s32 0, %v1301_v7 }
 0x188   : > { %v842_v52 = vadd.f32 %v840_v41, %v836_v46  ;;  %v843_v53 = vadd.f32 %v841_v61, %v837_v47  ;;  %v867_v63 = vpop.permute.xlu1 %866  ;;  %v802_v54 = vrot.slane %v795_v37, %v1376_v36  ;;  %v678_v0 = vadd.f32 %v677_v50, %v627_v48 }
 0x189   : > { %v869_v4 = vsel %vm868_vm11, %v865_v45, %v867_v63  ;;  %v873_v23 = vsel %vm868_vm11, %v867_v63, %v865_v45  ;;  %v760_v25 = vmul.f32 %v1070_v11, %v758_v59  ;;  %v931_v41 = vsub.s32 1, %v1301_v7 }
 0x18a   : > { %v846_v2 = vcombine.low %v842_v52, %v843_v53  ;;  %v809_v12 = vrot.slane %v802_v54, %v1376_v36  ;;  %v887_v24 = vmul.f32 %v886_v1, %v869_v4  ;;  %v710_v15 = vadd.f32 %v709_v6, %v678_v0 }
 0x18b   : > { %v888_v18 = vmul.f32 %v886_v1, %v873_v23  ;;  %v938_v61 = vcombine.high %v384_v44, %v384_v44  ;;  %v424_v53 = vmul.f32 %v1314_v16, %v1314_v16 }
 0x18c   : > { %v853_v9 = vrot.slane %v846_v2, %v1376_v36  ;;  %v877_v10 = vpop.permute.xlu1 %876  ;;  %v761_v3 = vadd.f32 %v760_v25, %v710_v15  ;;  %v811_v29 = vmul.f32 %v1073_v22, %v809_v12 }
 0x18d   : > { %v878_v13 = vsel %vm868_vm11, %v875_v42, %v877_v10  ;;  %v882_v14 = vsel %vm868_vm11, %v877_v10, %v875_v42 }
 0x18e   : > { %v891_v19 = vmul.f32 %v890_v5, %v878_v13  ;;  %v892_v21 = vmul.f32 %v890_v5, %v882_v14  ;;  %v860_v27 = vrot.slane %v853_v9, %v1376_v36  ;;  %v812_v33 = vadd.f32 %v811_v29, %v761_v3 }
 0x190   : > { %v893_v28 = vadd.f32 %v891_v19, %v887_v24  ;;  %v894_v20 = vadd.f32 %v892_v21, %v888_v18  ;;  %v862_v32 = vmul.f32 %v1076_v60, %v860_v27 }
 0x192   : > { %v897_v31 = vcombine.low %v893_v28, %v894_v20  ;;  %v863_v35 = vadd.f32 %v862_v32, %v812_v33 }
 0x194   : > { %v904_v58 = vrot.slane %v897_v31, %v1376_v36 }
 0x196   : > { %v911_v34 = vrot.slane %v904_v58, %v1376_v36 }
 0x198   : > { %v913_v55 = vmul.f32 %v1079_v62, %v911_v34 }
 0x19a   : > { %v914_v56 = vadd.f32 %v913_v55, %v863_v35 }
 0x19c   : > { %v1082_v57 = vmul.f32 -1.442695, %v914_v56 }
 0x19e   : > { %1135 = vpow2.f32 %v1082_v57 }
 0x1a8   : > { %v1136_v38 = vpop.eup %1135 }
 0x1a9   : > { %v918_v26 = vadd.f32 1.0, %v1136_v38 }
 0x1ab   : > { %1137 = vrcp.f32 %v918_v26 }
 0x1b5   : > { %v1138_v39 = vpop.eup %1137 }
 0x1b6   : > { %v921_v36 = vand.u32 2147483647, %v1138_v39 }
 0x1b8   : > { %vm922_vm12 = vcmp.gt.f32.partialorder %v921_v36, 0.2 }
 0x1b9   : > { %v923_v43 = vsel %vm922_vm12, %v1138_v39, 0.0 }
 0x1ba   : > { %v928_v45 = vrot.slane %v923_v43, %v927_v40  ;;  %v932_v37 = vrot.slane %v923_v43, %v931_v41 }
 0x1bc   : > { %v935_v46 = vmul.f32 %v928_v45, %v1314_v16  ;;  %v936_v47 = vmul.f32 %v932_v37, %v1318_v17 }
 0x1be   : > { %v940_v48 = vadd.f32 %v935_v46, %v384_v44  ;;  %v941_v49 = vadd.f32 %v938_v61, %v936_v47 }
 0x1c0   : > { %v942_v50 = vmax.f32 %v940_v48, 0.0  ;;  %v943_v51 = vmax.f32 %v941_v49, 0.0 }
 0x1c2   : > { %v946_v7 = vcombine.low %v942_v50, %v943_v51 }
 0x1c4   : > { %1083 = vst [vmem:[%s353_s20 + $0x8] sm:$0xff] %v946_v7 }
 0x1f9   : > { %v428_v52 = vpop.permute.xlu0 %427 }
 0x1fa   : > { %v435_v63 = vrot.slane %v428_v52, %v1305_v8 }
 0x1fc   : > { %v437_v30 = vmul.f32 %v435_v63, %v424_v53 }
 0x1fe   : > { %v438_v54 = vadd.f32 %v437_v30, %v384_v44 }
 0x200   : > { %v439_v17 = vmax.f32 %v438_v54, 0.0 }
 0x202   : > { %440 = vst [vmem:[%s353_s20] sm:$0xff] %v439_v17 }
 0x203 PF: > { %s21_s29 = sadd.s32 1, %s1183_s29  }
 0x204   : > { %p18_p5 = scmp.ge.s32.totalorder %s21_s29, 4  }
 0x206   :  { %20 = sbr.rel (!%p18_p5) target bundleno = 4 (0x4), region = 103 }
 0x20d   :  { %971 = vsyncpa [#allocation4], 1 }
 0x20e   :  { %973 = vsyncpa [#allocation4 + $0x1], 1 }
 0x20f   :  { %974 = vsyncpa [#allocation6], 1 }

// kernel: basic_block_forward.2
= control target key start
LH: loop header
LB: loop body
LE: loop exit
PB: predicated region body
PF: predicated region fallthrough
CT: control target
= control target key end

     0   :  { %s1287_s15 = smov 0   ;;  %s1451_s0 = inlined_call_operand.vmem [shape: bf16[2,4,256], index: 0, kind: input, shape index: {}]   ;;  %s1452_s1 = inlined_call_operand.vmem [shape: bf16[9,4,4], index: 1, kind: input, shape index: {}]   ;;  %s1453_s2 = inlined_call_operand.vmem [shape: bf16[9,256], index: 2, kind: input, shape index: {}]   ;;  %s1454_s3 = inlined_call_operand.vmem [shape: f32[2,4,256], index: 3, kind: output, shape index: {0}]   ;;  %s1455_s4 = inlined_call_operand.vmem [shape: f32[2,4,2], index: 4, kind: output, shape index: {1}]  }
   0x1 LB: > { %s1124_s16 = sadd.s32 4294967295, %s1250_s15   ;;  %p1128_p0 = scmp.ge.s32.totalorder %s1250_s15, 1  ;;  %s1250_s15 = sphi %s1287_s15, %s15_s15  }
   0x2   : > { %p165_p1 = scmp.lt.s32.totalorder %s1250_s15, 3 }
   0x4   : > { %p166_p2 = pnand %p1128_p0, %p165_p1 }
   0x5   : > { %p195_p3 = scmp.lt.s32.totalorder (!%p166_p2), %s1124_s16, 1  ;;  %v215_v0 = vlaneseq (!%p166_p2)  ;;  %v1252_v1 = vmov (!%p166_p2), 1983009808   ;;  %v565_v3 = vld [vmem:[%s1453_s2] sm:$0x44] (!%p166_p2)  ;;  %v1253_v4 = vmov (!%p166_p2), 0  }
   0x6   : > { %169 = sbr.rel (%p166_p2) target bundleno = 546 (0x222), region = 32  ;;  %v213_v2 = vunpack.c.l.s4 (!%p166_p2), %v1252_v1  ;;  %649 = vmatprep.mubr.bf16.mxu0 (!%p166_p2), %v1253_v4  ;;  %328 = vmatprep.mubr.bf16.mxu1 (!%p166_p2), %v1253_v4  ;;  %v1151_v6 = vcombine.low (!%p166_p2), %v565_v3, %v565_v3  ;;  %v1152_v7 = vcombine.high (!%p166_p2), %v565_v3, %v565_v3  ;;  %s1254_s23 = smov (!%p166_p2), 127   ;;  %vm289_vm0 = vcmask (!%p166_p2), 1041408   ;;  %v1153_v24 = vld [vmem:[%s1452_s1 + $0x8] sm:$0x3] (!%p166_p2) }
   0x7   : > { %v1302_v5 = vshrl.u32 (!%p166_p2), %v215_v0, 7  ;;  %s1255_s24 = smov (!%p166_p2), 16   ;;  %s1256_s25 = smov (!%p166_p2), 17   ;;  %vm285_vm1 = vcmask (!%p166_p2), 31744   ;;  %v672_v25 = vld [vmem:[%s1453_s2] sm:$0x44] (!%p166_p2) }
   0x8   : > { %v214_v8 = vunpack.c.0.s8 (!%p166_p2), %v213_v2  ;;  %v572_v9 = vpack.i.b16 (!%p166_p2), %v1151_v6, %v1151_v6  ;;  %v579_v11 = vpack.i.b16 (!%p166_p2), %v1152_v7, %v1152_v7  ;;  %s1257_s28 = smov (!%p166_p2), 113   ;;  %s1258_s29 = smov (!%p166_p2), 15   ;;  %v232_v26 = vld [vmem:[%s1453_s2] sm:$0x11] (!%p166_p2)  ;;  %v1156_v27 = vcombine.low (!%p166_p2), %v672_v25, %v672_v25  ;;  %v762_v37 = vld [vmem:[%s1453_s2] sm:$0x88] (!%p166_p2) }
   0x9   : > { %v1306_v10 = vsub.s32 (!%p166_p2), 2, %v1302_v5  ;;  %s1259_s30 = smov (!%p166_p2), 112   ;;  %s1260_s5 = smov (!%p166_p2), 1   ;;  %v1157_v28 = vcombine.high (!%p166_p2), %v672_v25, %v672_v25  ;;  %v1135_v29 = vcombine.high (!%p166_p2), %v232_v26, %v232_v26  ;;  %v1134_v30 = vcombine.low (!%p166_p2), %v232_v26, %v232_v26  ;;  %v399_v49 = vld [vmem:[%s1453_s2] sm:$0x22] (!%p166_p2) }
   0xa   : > { %v217_v12 = vsub.s32 (!%p166_p2), %v214_v8, %v1302_v5  ;;  %s1261_s6 = smov (!%p166_p2), 111   ;;  %v679_v31 = vshrl.u32 (!%p166_p2), %v1156_v27, 16  ;;  %v1333_v39 = vsub.s32 (!%p166_p2), 0, %v1302_v5  ;;  %v1161_v43 = vcombine.low (!%p166_p2), %v762_v37, %v762_v37  ;;  %v850_v50 = vld [vmem:[%s1453_s2] sm:$0x88] (!%p166_p2) }
   0xb   : > { %v577_v14 = vrot.slane (!%p166_p2), %v572_v9, %v1306_v10  ;;  %v584_v15 = vrot.slane (!%p166_p2), %v579_v11, %v1306_v10  ;;  %v687_v32 = vshrl.u32 (!%p166_p2), %v1157_v28, 16  ;;  %v274_v33 = vshrl.u32 (!%p166_p2), %v1135_v29, 16 }
   0xc   : > { %v267_v34 = vshrl.u32 (!%p166_p2), %v1134_v30, 16  ;;  %v680_v35 = vpack.i.b16 (!%p166_p2), %v679_v31, %v679_v31  ;;  %v239_v42 = vpack.i.b16 (!%p166_p2), %v1134_v30, %v1134_v30  ;;  %v1162_v44 = vcombine.high (!%p166_p2), %v762_v37, %v762_v37 }
   0xd   : > { %s1457_s16 = smov (!%p195_p3, %s1124_s16), 1  ;;  %v587_v17 = vcombine.low %v577_v14, %v584_v15  ;;  %v688_v36 = vpack.i.b16 %v687_v32, %v687_v32  ;;  %v275_v40 = vpack.i.b16 %v274_v33, %v274_v33  ;;  %vm664_vm2 = vcmask 1039360  }
   0xe   : > { %s1178_s19 = sshll.u32 %s1457_s16, 2  ;;  %v268_v41 = vpack.i.b16 %v267_v34, %v267_v34  ;;  %v685_v46 = vrot.slane %v680_v35, %v1306_v10  ;;  %vm259_vm3 = vcmask 130048   ;;  %vm224_vm4 = vcmask 138240   ;;  %s1179_s14 = sshll.u32 %s1457_s16, 3 }
   0xf   : > { %s199_s22 = scalar_lea.vmem %s1451_s0, %s1178_s19  ;;  %v594_v19 = vrot.slane %v587_v17, %v217_v12  ;;  %v693_v47 = vrot.slane %v688_v36, %v1306_v10  ;;  %v246_v48 = vpack.i.b16 %v1135_v29, %v1135_v29  ;;  %v280_v52 = vrot.slane %v275_v40, %v1333_v39  ;;  %s204_s20 = scalar_lea.vmem %s1454_s3, %s1179_s14 }
  0x10   : > { %v210_v13 = vld [vmem:[%s199_s22] sm:$0xf]  ;;  %v273_v53 = vrot.slane %v268_v41, %v1333_v39  ;;  %v244_v54 = vrot.slane %v239_v42, %v1333_v39  ;;  %v1347_v55 = vsub.s32 3, %v1302_v5  ;;  %v769_v58 = vpack.i.b16 %v1161_v43, %v1161_v43  ;;  %v940_v43 = vld [vmem:[%s1453_s2 + $0x8] sm:$0x11] }
  0x11   : > { %v218_v16 = vrot.slane %v210_v13, %v217_v12  ;;  %v596_v20 = vmul.bf16 %v594_v19, %v210_v13  ;;  %v776_v59 = vpack.i.b16 %v1162_v44, %v1162_v44  ;;  %v1141_v63 = vcombine.low %v399_v49, %v399_v49  ;;  %v1158_v13 = vld [vmem:[%s1452_s1 + $0xa] sm:$0x3] }
  0x12   : > { %v1166_v0 = vcombine.low %v850_v50, %v850_v50  ;;  %v251_v3 = vrot.slane %v246_v48, %v1333_v39  ;;  %v1142_v6 = vcombine.high %v399_v49, %v399_v49  ;;  %v1167_v11 = vcombine.high %v850_v50, %v850_v50 }
  0x13   : > { %660 = vrot.lane.b32.xlu1 %v218_v16, %s1254_s23  ;;  %v219_v18 = vcombine.high %v218_v16, %v218_v16  ;;  %v606_v21 = vrot.slane %v596_v20, %v217_v12  ;;  %v487_v12 = vld [vmem:[%s1453_s2] sm:$0x22]  ;;  %vm754_vm5 = vcmask 924672   ;;  %v774_v14 = vrot.slane %v769_v58, %v1347_v55  ;;  %v1163_v58 = vld [vmem:[%s1452_s1 + $0xc] sm:$0x3] }
  0x14   : > { %v781_v17 = vrot.slane %v776_v59, %v1347_v55  ;;  %v857_v19 = vshrl.u32 %v1166_v0, 16  ;;  %v413_v28 = vpack.i.b16 %v1142_v6, %v1142_v6  ;;  %v865_v29 = vshrl.u32 %v1167_v11, 16 }
  0x15   : > { %255 = vrot.lane.b32.xlu0 %v219_v18, %s1255_s24  ;;  %v607_v22 = vcombine.high %v606_v21, %v606_v21  ;;  %v612_v23 = vsel %vm289_vm0, %v606_v21, 0  ;;  %vm391_vm6 = vcmask 121856   ;;  %v1146_v32 = vcombine.low %v487_v12, %v487_v12 }
  0x16   : > { %v866_v42 = vpack.i.b16 %v865_v29, %v865_v29  ;;  %vm842_vm7 = vcmask 916480   ;;  %vm479_vm8 = vcmask 7168   ;;  %vm932_vm9 = vcmask 908288  }
  0x17   : > { %662 = vrot.lane.b32.xlu1 %v219_v18, %s1254_s23  ;;  %1154 = vmatprep.subr.msk.bf16.mxu0 %vm289_vm0, %v607_v22  ;;  %v1136_v22 = vld [vmem:[%s1452_s1 + $0x2] sm:$0x3]  ;;  %vm1021_vm10 = vcmask 1043456   ;;  %s208_s23 = scalar_lea.vmem %s1455_s4, %s1178_s19  ;;  %vm1027_vm11 = vcmask 3072   ;;  %vm1036_vm12 = vcmask 11272  }
  0x18   : > { %618 = vmatpush1.bf16.msra.mxu0 %v612_v23  ;;  %v1370_v23 = vsub.s32 1, %v1302_v5  ;;  %v858_v5 = vpack.i.b16 %v857_v19, %v857_v19 }
  0x19   : > { %257 = vrot.lane.b32.xlu0 %v218_v16, %s1255_s24 }
  0x1a   : > { %v418_v41 = vrot.slane %v413_v28, %v1370_v23 }
  0x1b   : > { %222 = vrot.lane.b32.xlu1 %v218_v16, %s1256_s25  ;;  %1155 = vmatmul.mubr.msk.bf16.vlgmr.msra.gmra.mrb[0].mxu0 %vm285_vm1, %v1153_v24  ;;  %v1147_v24 = vcombine.high %v487_v12, %v487_v12 }
  0x1c   : > { %739 = vmatprep.mubr.bf16.mxu0 %v1253_v4 }
  0x1d   : > { %220 = vrot.lane.b32.xlu0 %v219_v18, %s1256_s25  ;;  %v502_v36 = vshrl.u32 %v1147_v24, 16 }
  0x1f   : > { %752 = vrot.lane.b32.xlu1 %v219_v18, %s1257_s28  ;;  %v503_v50 = vpack.i.b16 %v502_v36, %v502_v36 }
  0x21   : > { %750 = vrot.lane.b32.xlu0 %v218_v16, %s1257_s28 }
  0x23   : > { %389 = vrot.lane.b32.xlu1 %v218_v16, %s1258_s29 }
  0x25   : > { %387 = vrot.lane.b32.xlu0 %v219_v18, %s1258_s29 }
  0x27   : > { %840 = vrot.lane.b32.xlu1 %v219_v18, %s1259_s30 }
  0x29   : > { %838 = vrot.lane.b32.xlu0 %v218_v16, %s1259_s30 }
  0x2b   : > { %477 = vrot.lane.b32.xlu1 %v218_v16, %s1260_s5 }
  0x2d   : > { %475 = vrot.lane.b32.xlu0 %v219_v18, %s1260_s5 }
  0x2f   : > { %930 = vrot.lane.b32.xlu1 %v219_v18, %s1261_s6  ;;  %v406_v18 = vpack.i.b16 %v1141_v63, %v1141_v63 }
  0x31   : > { %928 = vrot.lane.b32.xlu0 %v218_v16, %s1261_s6  ;;  %v411_v35 = vrot.slane %v406_v18, %v1370_v23 }
  0x85   : > { %v661_v38 = vpop.permute.xlu1 %660 }
  0x87   : > { %v256_v45 = vpop.permute.xlu0 %255 }
  0x89   : > { %v663_v51 = vpop.permute.xlu1 %662 }
  0x8a   : > { %v665_v56 = vsel %vm664_vm2, %v661_v38, %v663_v51  ;;  %v670_v57 = vsel %vm664_vm2, %v663_v51, %v661_v38  ;;  %v1171_v51 = vcombine.low %v940_v43, %v940_v43 }
  0x8b   : > { %v694_v60 = vmul.bf16 %v685_v46, %v665_v56  ;;  %v695_v61 = vmul.bf16 %v693_v47, %v670_v57  ;;  %v258_v62 = vpop.permute.xlu0 %257  ;;  %v863_v46 = vrot.slane %v858_v5, %v1347_v55  ;;  %v494_v47 = vshrl.u32 %v1146_v32, 16 }
  0x8c   : > { %v260_v1 = vsel %vm259_vm3, %v258_v62, %v256_v45  ;;  %v265_v2 = vsel %vm259_vm3, %v256_v45, %v258_v62  ;;  %v871_v56 = vrot.slane %v866_v42, %v1347_v55  ;;  %v1172_v57 = vcombine.high %v940_v43, %v940_v43 }
  0x8d   : > { %1159 = vmatprep.subr.msk.bf16.mxu0 %vm289_vm0, %v695_v61  ;;  %v702_v7 = vsel %vm289_vm0, %v694_v60, 0  ;;  %v282_v8 = vmul.bf16 %v280_v52, %v260_v1  ;;  %v281_v9 = vmul.bf16 %v273_v53, %v265_v2  ;;  %v223_v10 = vpop.permute.xlu1 %222  ;;  %v495_v60 = vpack.i.b16 %v494_v47, %v494_v47  ;;  %v254_v61 = vld [vmem:[%s1452_s1] sm:$0x3] }
  0x8e   : > { %708 = vmatpush1.bf16.msra.mxu0 %v702_v7  ;;  %v508_v55 = vrot.slane %v503_v50, %v1370_v23  ;;  %v947_v0 = vpack.i.b16 %v1171_v51, %v1171_v51  ;;  %v954_v7 = vpack.i.b16 %v1172_v57, %v1172_v57 }
  0x8f   : > { %1137 = vmatprep.subr.msk.bf16.mxu1 %vm289_vm0, %v282_v8  ;;  %v291_v15 = vsel %vm289_vm0, %v281_v9, 0  ;;  %v221_v16 = vpop.permute.xlu0 %220 }
  0x90   : > { %297 = vmatpush1.bf16.msra.mxu1 %v291_v15  ;;  %v225_v20 = vsel %vm224_vm4, %v223_v10, %v221_v16  ;;  %v230_v21 = vsel %vm224_vm4, %v221_v16, %v223_v10  ;;  %v500_v10 = vrot.slane %v495_v60, %v1370_v23  ;;  %v959_v15 = vrot.slane %v954_v7, %v1333_v39  ;;  %v1168_v23 = vld [vmem:[%s1452_s1 + $0xe] sm:$0x3] }
  0x91   : > { %1160 = vmatmul.mubr.msk.bf16.vlgmr.msra.gmra.mrb[0].mxu0 %vm285_vm1, %v1158_v13  ;;  %v252_v25 = vmul.bf16 %v244_v54, %v230_v21  ;;  %v253_v26 = vmul.bf16 %v251_v3, %v225_v20  ;;  %v753_v27 = vpop.permute.xlu1 %752 }
  0x92   : > { %827 = vmatprep.mubr.bf16.mxu0 %v1253_v4 }
  0x93   : > { %1138 = vmatmul.mubr.msk.bf16.vlgmr.msra.gmra.mrb[0].mxu1 %vm285_vm1, %v1136_v22  ;;  %1139 = vmatprep.subr.msk.bf16.mxu1 %vm289_vm0, %v253_v26  ;;  %v751_v30 = vpop.permute.xlu0 %750  ;;  %v341_v31 = vsel %vm289_vm0, %v252_v25, 0  ;;  %v1173_v26 = vld [vmem:[%s1452_s1 + $0x10] sm:$0x3] }
  0x94   : > { %v755_v33 = vsel %vm754_vm5, %v751_v30, %v753_v27  ;;  %v760_v34 = vsel %vm754_vm5, %v753_v27, %v751_v30  ;;  %347 = vmatpush1.bf16.msra.mxu1 %v341_v31  ;;  %378 = vmatprep.mubr.bf16.mxu1 %v1253_v4  ;;  %v1148_v27 = vld [vmem:[%s1452_s1 + $0x6] sm:$0x3] }
  0x95   : > { %v782_v37 = vmul.bf16 %v774_v14, %v755_v33  ;;  %v783_v38 = vmul.bf16 %v781_v17, %v760_v34  ;;  %v390_v40 = vpop.permute.xlu1 %389  ;;  %v952_v14 = vrot.slane %v947_v0, %v1333_v39  ;;  %v1143_v39 = vld [vmem:[%s1452_s1 + $0x4] sm:$0x3] }
  0x97   : > { %1164 = vmatprep.subr.msk.bf16.mxu0 %vm289_vm0, %v783_v38  ;;  %v790_v44 = vsel %vm289_vm0, %v782_v37, 0  ;;  %v388_v45 = vpop.permute.xlu0 %387 }
  0x98   : > { %796 = vmatpush1.bf16.msra.mxu0 %v790_v44  ;;  %v392_v48 = vsel %vm391_vm6, %v390_v40, %v388_v45  ;;  %v397_v49 = vsel %vm391_vm6, %v388_v45, %v390_v40 }
  0x99   : > { %v419_v52 = vmul.bf16 %v411_v35, %v397_v49  ;;  %v420_v53 = vmul.bf16 %v418_v41, %v392_v48  ;;  %v841_v54 = vpop.permute.xlu1 %840 }
  0x9b   : > { %1144 = vmatprep.subr.msk.bf16.mxu1 %vm289_vm0, %v420_v53  ;;  %v839_v59 = vpop.permute.xlu0 %838  ;;  %v427_v3 = vsel %vm289_vm0, %v419_v52, 0 }
  0x9c   : > { %v843_v62 = vsel %vm842_vm7, %v839_v59, %v841_v54  ;;  %v848_v63 = vsel %vm842_vm7, %v841_v54, %v839_v59 }
  0x9d   : > { %1165 = vmatmul.mubr.msk.bf16.vlgmr.msra.gmra.mrb[0].mxu0 %vm285_vm1, %v1163_v58  ;;  %v872_v1 = vmul.bf16 %v863_v46, %v843_v62  ;;  %v873_v2 = vmul.bf16 %v871_v56, %v848_v63  ;;  %v478_v6 = vpop.permute.xlu1 %477 }
  0x9e   : > { %917 = vmatprep.mubr.bf16.mxu0 %v1253_v4 }
  0x9f   : > { %1140 = vmatmul.mubr.msk.bf16.vlgmr.msra.gmra.mrb[0].mxu1 %vm285_vm1, %v254_v61  ;;  %1169 = vmatprep.subr.msk.bf16.mxu0 %vm289_vm0, %v873_v2  ;;  %v880_v8 = vsel %vm289_vm0, %v872_v1, 0  ;;  %v476_v9 = vpop.permute.xlu0 %475 }
  0xa0   : > { %433 = vmatpush1.bf16.msra.mxu1 %v427_v3  ;;  %886 = vmatpush1.bf16.msra.mxu0 %v880_v8  ;;  %v480_v11 = vsel %vm479_vm8, %v478_v6, %v476_v9  ;;  %v485_v16 = vsel %vm479_vm8, %v476_v9, %v478_v6 }
  0xa1   : > { %v510_v12 = vmul.bf16 %v508_v55, %v480_v11  ;;  %464 = vmatprep.mubr.bf16.mxu1 %v1253_v4  ;;  %v931_v13 = vpop.permute.xlu1 %930  ;;  %v509_v20 = vmul.bf16 %v500_v10, %v485_v16 }
  0xa3   : > { %1149 = vmatprep.subr.msk.bf16.mxu1 %vm289_vm0, %v510_v12  ;;  %v929_v17 = vpop.permute.xlu0 %928  ;;  %v517_v25 = vsel %vm289_vm0, %v509_v20, 0 }
  0xa4   : > { %v933_v18 = vsel %vm932_vm9, %v929_v17, %v931_v13  ;;  %v938_v19 = vsel %vm932_vm9, %v931_v13, %v929_v17 }
  0xa5   : > { %v960_v21 = vmul.bf16 %v952_v14, %v933_v18  ;;  %v961_v22 = vmul.bf16 %v959_v15, %v938_v19 }
  0xa7   : > { %1174 = vmatprep.subr.msk.bf16.mxu0 %vm289_vm0, %v961_v22  ;;  %v968_v24 = vsel %vm289_vm0, %v960_v21, 0 }
  0xa9   : > { %1170 = vmatmul.mubr.msk.bf16.vlgmr.msra.gmra.mrb[0].mxu0 %vm285_vm1, %v1168_v23 }
  0xaa   : > { %974 = vmatpush1.bf16.msra.mxu0 %v968_v24  ;;  %1005 = vmatprep.mubr.bf16.mxu0 %v1253_v4 }
  0xab   : > { %1145 = vmatmul.mubr.msk.bf16.vlgmr.msra.gmra.mrb[0].mxu1 %vm285_vm1, %v1143_v39 }
  0xac   : > { %523 = vmatpush1.bf16.msra.mxu1 %v517_v25  ;;  %554 = vmatprep.mubr.bf16.mxu1 %v1253_v4 }
  0xb5   : > { %1175 = vmatmul.mubr.msk.bf16.vlgmr.msra.gmra.mrb[0].mxu0 %vm285_vm1, %v1173_v26 }
  0xb7   : > { %1150 = vmatmul.mubr.msk.bf16.vlgmr.msra.gmra.mrb[0].mxu1 %vm285_vm1, %v1148_v27 }
 0x188   : > { %v1007_v28 = vpop.f32.mrb[0].mxu0 }
 0x189   : > { %v1009_v29 = vpop.f32.mrb[1].mxu0 }
 0x18a   : > { %v556_v30 = vpop.f32.mrb[0].mxu1  ;;  %v1011_v31 = vpop.f32.mrb[2].mxu0 }
 0x18b   : > { %v1180_v5 = vadd.f32 %v1007_v28, %v556_v30  ;;  %v558_v4 = vpop.f32.mrb[1].mxu1  ;;  %v1012_v32 = vpop.f32.mrb[3].mxu0 }
 0x18c   : > { %v1181_v33 = vadd.f32 %v1009_v29, %v558_v4  ;;  %v560_v34 = vpop.f32.mrb[2].mxu1 }
 0x18d   : > { %v561_v35 = vpop.f32.mrb[3].mxu1  ;;  %v1022_v36 = vsel %vm1021_vm10, %v1180_v5, 0.0  ;;  %v1029_v37 = vmul.f32 %v1180_v5, %v1180_v5 }
 0x18e   : > { %v1018_v38 = vcombine.low %v1180_v5, %v1181_v33  ;;  %v1023_v40 = vsel %vm1021_vm10, %v1181_v33, 0.0  ;;  %v1030_v41 = vmul.f32 %v1181_v33, %v1181_v33 }
 0x18f   : > { %v1024_v42 = vadd.f32 %v1023_v40, %v1022_v36  ;;  %v1031_v43 = vsel %vm1021_vm10, %v1029_v37, 0.0 }
 0x190   : > { %1020 = vst [vmem:[%s204_s20] sm:$0xff] %v1018_v38  ;;  %v1032_v44 = vsel %vm1021_vm10, %v1030_v41, 0.0 }
 0x191   : > { %1025 = vadd.xlane.f32.xlu0 %v1024_v42  ;;  %v1033_v45 = vadd.f32 %v1032_v44, %v1031_v43 }
 0x193   : > { %1034 = vadd.xlane.f32.xlu1 %v1033_v45 }
 0x21e   : > { %v1026_v46 = vpop.xlane.xlu0 %1025 }
 0x21f   : > { %1028 = vst.msk [vmem:[%s208_s23] sm:$0xf] %vm1027_vm11, %v1026_v46 }
 0x220   : > { %v1035_v47 = vpop.xlane.xlu1 %1034 }
 0x221   : > { %1037 = vst.msk [vmem:[%s208_s23] sm:$0xf] %vm1036_vm12, %v1035_v47 }
 0x222 PF: > { %s15_s15 = sadd.s32 1, %s1250_s15  }
 0x223   : > { %p12_p4 = scmp.ge.s32.totalorder %s15_s15, 4  }
 0x225   :  { %14 = sbr.rel (!%p12_p4) target bundleno = 1 (0x1), region = 82 }

</bundles_post_ra>
